<compile_context>
chip_gen: v6e
topology: v6e:2x2x1
jax: 0.10.0
libtpu: 0.0.40
codegen_flags: <defaults>
</compile_context>

<pallas_src>
import functools

import jax
import jax.numpy as jnp
import numpy as np
from jax.experimental import pallas as pl
from jax.experimental.pallas import tpu as pltpu

WINDOW_SIZE_LIST = [3, 5, 7, 11, 15, 19]
INIT_K = 0.2
INIT_R = 0.5


def _sauvola_kernel(sk_ref, skr_ref, x_ref, lh_ref, uw_ref, invc_ref, o_ref,
                    *, wins, H, W, m):
    x = x_ref[0]                       # (H, W) image slice
    lh = lh_ref[...]                   # (HP, H)  padded row-cumsum matrix
    uw = uw_ref[...]                   # (W, WP)  padded col-cumsum matrix

    # Mean shift: var = E[(x-mu)^2] - E[x-mu]^2 is far better conditioned in
    # f32 than E[x^2] - E[x]^2 (padding contributes 0 either way and counts
    # only cover valid pixels, so the identity holds exactly).
    mu = jnp.mean(x)
    xs = x - mu

    # Fused integral images of the (implicitly zero-padded) xs and xs*xs:
    # one MXU issue for the column cumsum of both, then one per row cumsum.
    xcat = jnp.concatenate([xs, xs * xs], axis=0)                     # (2H, W)
    s = jnp.dot(xcat, uw, preferred_element_type=jnp.float32)         # (2H, WP)
    x_ii = jnp.dot(lh, s[:H, :], preferred_element_type=jnp.float32)  # (HP, WP)
    x2_ii = jnp.dot(lh, s[H:, :], preferred_element_type=jnp.float32)  # (HP, WP)

    for wi, win in enumerate(wins):
        h = w = win
        top = m - h // 2
        bot = top + h
        left = m - w // 2
        right = left + w

        def box(ii):
            return (ii[top:top + H, left:left + W]
                    + ii[bot:bot + H, right:right + W]
                    - ii[top:top + H, right:right + W]
                    - ii[bot:bot + H, left:left + W])

        inv_cnt = invc_ref[wi]                 # (H, W), data-independent
        e_xs = box(x_ii) * inv_cnt             # E[x - mu]
        e_xs2 = box(x2_ii) * inv_cnt           # E[(x - mu)^2]
        dev = jnp.sqrt(jnp.maximum(e_xs2 - e_xs * e_xs, 1e-6))
        e_x = e_xs + mu
        one_minus_k = sk_ref[wi]               # SMEM scalar: 1 - k
        k_over_R = skr_ref[wi]                 # SMEM scalar: k / R
        t = e_x * one_minus_k + k_over_R * (e_x * dev)
        o_ref[0, wi, :, :] = t.astype(o_ref.dtype)


def sauvola_multi_window(x, k, R, window_size_list=WINDOW_SIZE_LIST):
    """x: (B, H, W, C) -> (B, n_wins, H, W, C) float32."""
    B, H, W, C = x.shape
    wins = tuple(int(w) for w in window_size_list)
    n_wins = len(wins)
    m = max(wins) // 2
    HP = H + 2 * (m + 1)
    WP = W + 2 * (m + 1)

    x = x.astype(jnp.float32)
    # Collapse (B, C) into the grid axis; no spatial padding in HBM (padding
    # is baked into the LH / UW matrices below).
    xt = jnp.transpose(x, (0, 3, 1, 2)).reshape(B * C, H, W)

    # Host-side constants (trace-time, depend only on the static shapes).
    lh = np.asarray(
        np.arange(HP)[:, None] >= np.arange(H)[None, :] + m + 1, np.float32)
    uw = np.asarray(
        np.arange(WP)[None, :] >= np.arange(W)[:, None] + m + 1, np.float32)
    inv_cnt = np.empty((n_wins, H, W), np.float32)
    for wi, win in enumerate(wins):
        hw = win // 2
        r = np.arange(H)
        c = np.arange(W)
        cnt_r = np.minimum(r + hw, H - 1) - np.maximum(r - hw, 0) + 1
        cnt_c = np.minimum(c + hw, W - 1) - np.maximum(c - hw, 0) + 1
        inv_cnt[wi] = 1.0 / (cnt_r[:, None] * cnt_c[None, :]).astype(np.float64)

    k_flat = jnp.asarray(k, jnp.float32).reshape(n_wins)
    R_flat = jnp.asarray(R, jnp.float32).reshape(n_wins)
    sk = 1.0 - k_flat                 # (1 - k)
    skr = k_flat / R_flat             # k / R

    kernel = functools.partial(_sauvola_kernel, wins=wins, H=H, W=W, m=m)

    # Rough per-step VMEM need (blocks double-buffered + temporaries), clamped
    # to [32 MiB, 64 MiB] so it is safe on v5e/v6e/v7x.
    est = 4 * (4 * H * W + 6 * n_wins * H * W + 2 * HP * H + 2 * W * WP
               + 6 * H * WP + 6 * HP * WP + 16 * H * W)
    vmem_limit = int(min(64 * 1024 * 1024, max(32 * 1024 * 1024, 4 * est)))

    out = pl.pallas_call(
        kernel,
        out_shape=jax.ShapeDtypeStruct((B * C, n_wins, H, W), jnp.float32),
        grid=(B * C,),
        in_specs=[
            pl.BlockSpec(memory_space=pltpu.MemorySpace.SMEM),   # 1 - k  (n_wins,)
            pl.BlockSpec(memory_space=pltpu.MemorySpace.SMEM),   # k / R  (n_wins,)
            pl.BlockSpec((1, H, W), lambda i: (i, 0, 0)),        # image slice
            pl.BlockSpec((HP, H), lambda i: (0, 0)),             # LH (hoisted)
            pl.BlockSpec((W, WP), lambda i: (0, 0)),             # UW (hoisted)
            pl.BlockSpec((n_wins, H, W), lambda i: (0, 0, 0)),   # 1/count maps
        ],
        out_specs=pl.BlockSpec((1, n_wins, H, W), lambda i: (i, 0, 0, 0)),
        compiler_params=pltpu.CompilerParams(
            dimension_semantics=("parallel",),
            vmem_limit_bytes=vmem_limit),
    )(sk, skr, xt, jnp.asarray(lh), jnp.asarray(uw), jnp.asarray(inv_cnt))

    out = out.reshape(B, C, n_wins, H, W)
    # TODO(synk): downstream code could consume the channel-major layout and
    # skip this transpose of the n_wins-times-larger output.
    return jnp.transpose(out, (0, 2, 3, 4, 1))   # (B, n_wins, H, W, C)


def _reference(x, k, R, wins):
    """NumPy float64 mirror of the PyTorch forward (module math in double)."""
    x = np.asarray(x, np.float64)
    B, H, W, C = x.shape
    m = max(wins) // 2

    def ii_buffer(a):
        ap = np.pad(a, ((0, 0), (m + 1, m + 1), (m + 1, m + 1), (0, 0)))
        return np.cumsum(np.cumsum(ap, axis=1), axis=2)

    def one_size(ii, h, w):
        top = m - h // 2
        bot = top + h
        left = m - w // 2
        right = left + w
        return (ii[:, top:top + H, left:left + W]
                + ii[:, bot:bot + H, right:right + W]
                - ii[:, top:top + H, right:right + W]
                - ii[:, bot:bot + H, left:left + W])

    counts = np.ones_like(x[:1, ..., :1])
    c_ii = ii_buffer(counts)
    x_ii = ii_buffer(x)
    x2_ii = ii_buffer(x * x)
    E_x = np.stack([one_size(x_ii, w, w) / one_size(c_ii, w, w) for w in wins],
                   axis=1)
    E_x2 = np.stack([one_size(x2_ii, w, w) / one_size(c_ii, w, w) for w in wins],
                    axis=1)
    dev = np.sqrt(np.maximum(E_x2 - E_x * E_x, 1e-6))
    k = np.asarray(k, np.float64)
    R = np.asarray(R, np.float64)
    return (E_x * (1.0 + k * (dev / R - 1.0))).astype(np.float32)


if __name__ == "__main__":
    key = jax.random.PRNGKey(0)
    B, H, W, C = 2, 16, 16, 4
    x = jax.random.uniform(key, (B, H, W, C), dtype=jnp.float32)

    n_wins = len(WINDOW_SIZE_LIST)
    # Deterministic parameter init, same as nn.Parameter(torch.full(...)).
    k = jnp.full((1, n_wins, 1, 1, 1), INIT_K, dtype=jnp.float32)
    R = jnp.full((1, n_wins, 1, 1, 1), INIT_R, dtype=jnp.float32)

    out = jax.jit(sauvola_multi_window)(x, k, R)
    out = jax.block_until_ready(out)

    ref = _reference(np.asarray(x), np.asarray(k), np.asarray(R),
                     WINDOW_SIZE_LIST)
    np.testing.assert_allclose(np.asarray(out), ref, rtol=2e-3, atol=2e-3)
    assert out.shape == (B, n_wins, H, W, C)
    print("KERNEL_OK")
</pallas_src>

<mosaic_0001>
module attributes {stable_mosaic.version = 11 : i64} {
  func.func @_sauvola_kernel(%arg0: i32, %arg1: memref<6xf32, #tpu.memory_space<smem>>, %arg2: memref<6xf32, #tpu.memory_space<smem>>, %arg3: memref<1x16x16xf32, #tpu.memory_space<vmem>>, %arg4: memref<36x16xf32, #tpu.memory_space<vmem>>, %arg5: memref<16x36xf32, #tpu.memory_space<vmem>>, %arg6: memref<6x16x16xf32, #tpu.memory_space<vmem>>, %arg7: memref<1x6x16x16xf32, #tpu.memory_space<vmem>>) attributes {dimension_semantics = [#tpu.dimension_semantics<parallel>], iteration_bounds = array<i64: 8>, scalar_prefetch = 0 : i64, scratch_operands = 0 : i64, tpu.core_type = #tpu.core_type<tc>, window_params = [{transform_indices = @transform_0, window_bounds = array<i64: 6>}, {transform_indices = @transform_1, window_bounds = array<i64: 6>}, {transform_indices = @transform_2, window_bounds = array<i64: 1, 16, 16>}, {pipeline_mode = #tpu.pipeline_mode<synchronous>, transform_indices = @transform_3, window_bounds = array<i64: 36, 16>}, {pipeline_mode = #tpu.pipeline_mode<synchronous>, transform_indices = @transform_4, window_bounds = array<i64: 16, 36>}, {pipeline_mode = #tpu.pipeline_mode<synchronous>, transform_indices = @transform_5, window_bounds = array<i64: 6, 16, 16>}, {transform_indices = @transform_6, window_bounds = array<i64: 1, 6, 16, 16>}]} {
    %c0 = arith.constant 0 : index
    %c0_0 = arith.constant 0 : index
    %c0_1 = arith.constant 0 : index
    %0 = vector.load %arg3[%c0, %c0_0, %c0_1] : memref<1x16x16xf32, #tpu.memory_space<vmem>>, vector<1x16x16xf32>
    %1 = vector.shape_cast %0 : vector<1x16x16xf32> to vector<16x16xf32>
    %c0_2 = arith.constant 0 : index
    %c0_3 = arith.constant 0 : index
    %2 = vector.load %arg4[%c0_2, %c0_3] : memref<36x16xf32, #tpu.memory_space<vmem>>, vector<36x16xf32>
    %c0_4 = arith.constant 0 : index
    %c0_5 = arith.constant 0 : index
    %3 = vector.load %arg5[%c0_4, %c0_5] : memref<16x36xf32, #tpu.memory_space<vmem>>, vector<16x36xf32>
    %4 = vector.shape_cast %1 : vector<16x16xf32> to vector<1x16x16xf32>
    %cst = arith.constant dense<0.000000e+00> : vector<1xf32>
    %5 = vector.multi_reduction <add>, %4, %cst [1, 2] : vector<1x16x16xf32> to vector<1xf32>
    %6 = vector.shape_cast %5 : vector<1xf32> to vector<1x1x1xf32>
    %7 = vector.extract %6[0, 0, 0] : f32 from vector<1x1x1xf32>
    %cst_6 = arith.constant 2.560000e+02 : f32
    %8 = arith.divf %7, %cst_6 : f32
    %9 = vector.broadcast %8 : f32 to vector<16x16xf32>
    %10 = arith.subf %1, %9 : vector<16x16xf32>
    %11 = arith.mulf %10, %10 : vector<16x16xf32>
    %12 = tpu.concatenate %10, %11 in 0 : vector<16x16xf32>, vector<16x16xf32> -> vector<32x16xf32>
    %cst_7 = arith.constant dense<0.000000e+00> : vector<32x36xf32>
    %13 = tpu.matmul %12, %3, %cst_7 {dimension_numbers = #tpu.dot_dimension_numbers<[1], [0], [0], [1], [0, 0, 1, 1], [], []>} : vector<32x16xf32>, vector<16x36xf32>, vector<32x36xf32> -> vector<32x36xf32>
    %14 = vector.extract_strided_slice %13 {offsets = [0, 0], sizes = [16, 36], strides = [1, 1]} : vector<32x36xf32> to vector<16x36xf32>
    %cst_8 = arith.constant dense<0.000000e+00> : vector<36x36xf32>
    %15 = tpu.matmul %2, %14, %cst_8 {dimension_numbers = #tpu.dot_dimension_numbers<[1], [0], [0], [1], [0, 0, 1, 1], [], []>} : vector<36x16xf32>, vector<16x36xf32>, vector<36x36xf32> -> vector<36x36xf32>
    %16 = vector.extract_strided_slice %13 {offsets = [16, 0], sizes = [16, 36], strides = [1, 1]} : vector<32x36xf32> to vector<16x36xf32>
    %cst_9 = arith.constant dense<0.000000e+00> : vector<36x36xf32>
    %17 = tpu.matmul %2, %16, %cst_9 {dimension_numbers = #tpu.dot_dimension_numbers<[1], [0], [0], [1], [0, 0, 1, 1], [], []>} : vector<36x16xf32>, vector<16x36xf32>, vector<36x36xf32> -> vector<36x36xf32>
    %c0_10 = arith.constant 0 : index
    %c0_11 = arith.constant 0 : index
    %c0_12 = arith.constant 0 : index
    %18 = vector.load %arg6[%c0_10, %c0_11, %c0_12] : memref<6x16x16xf32, #tpu.memory_space<vmem>>, vector<1x16x16xf32>
    %19 = vector.shape_cast %18 : vector<1x16x16xf32> to vector<16x16xf32>
    %20 = vector.extract_strided_slice %15 {offsets = [8, 8], sizes = [16, 16], strides = [1, 1]} : vector<36x36xf32> to vector<16x16xf32>
    %21 = vector.extract_strided_slice %15 {offsets = [11, 11], sizes = [16, 16], strides = [1, 1]} : vector<36x36xf32> to vector<16x16xf32>
    %22 = arith.addf %20, %21 : vector<16x16xf32>
    %23 = vector.extract_strided_slice %15 {offsets = [8, 11], sizes = [16, 16], strides = [1, 1]} : vector<36x36xf32> to vector<16x16xf32>
    %24 = arith.subf %22, %23 : vector<16x16xf32>
    %25 = vector.extract_strided_slice %15 {offsets = [11, 8], sizes = [16, 16], strides = [1, 1]} : vector<36x36xf32> to vector<16x16xf32>
    %26 = arith.subf %24, %25 : vector<16x16xf32>
    %27 = arith.mulf %26, %19 : vector<16x16xf32>
    %28 = vector.extract_strided_slice %17 {offsets = [8, 8], sizes = [16, 16], strides = [1, 1]} : vector<36x36xf32> to vector<16x16xf32>
    %29 = vector.extract_strided_slice %17 {offsets = [11, 11], sizes = [16, 16], strides = [1, 1]} : vector<36x36xf32> to vector<16x16xf32>
    %30 = arith.addf %28, %29 : vector<16x16xf32>
    %31 = vector.extract_strided_slice %17 {offsets = [8, 11], sizes = [16, 16], strides = [1, 1]} : vector<36x36xf32> to vector<16x16xf32>
    %32 = arith.subf %30, %31 : vector<16x16xf32>
    %33 = vector.extract_strided_slice %17 {offsets = [11, 8], sizes = [16, 16], strides = [1, 1]} : vector<36x36xf32> to vector<16x16xf32>
    %34 = arith.subf %32, %33 : vector<16x16xf32>
    %35 = arith.mulf %34, %19 : vector<16x16xf32>
    %36 = arith.mulf %27, %27 : vector<16x16xf32>
    %37 = arith.subf %35, %36 : vector<16x16xf32>
    %cst_13 = arith.constant 9.99999997E-7 : f32
    %38 = vector.broadcast %cst_13 : f32 to vector<16x16xf32>
    %39 = arith.maximumf %37, %38 : vector<16x16xf32>
    %40 = math.sqrt %39 : vector<16x16xf32>
    %41 = vector.broadcast %8 : f32 to vector<16x16xf32>
    %42 = arith.addf %27, %41 : vector<16x16xf32>
    %c0_14 = arith.constant 0 : index
    %43 = memref.load %arg1[%c0_14] : memref<6xf32, #tpu.memory_space<smem>>
    %c0_15 = arith.constant 0 : index
    %44 = memref.load %arg2[%c0_15] : memref<6xf32, #tpu.memory_space<smem>>
    %45 = vector.broadcast %43 : f32 to vector<16x16xf32>
    %46 = arith.mulf %42, %45 : vector<16x16xf32>
    %47 = arith.mulf %42, %40 : vector<16x16xf32>
    %48 = vector.broadcast %44 : f32 to vector<16x16xf32>
    %49 = arith.mulf %48, %47 : vector<16x16xf32>
    %50 = arith.addf %46, %49 : vector<16x16xf32>
    %c0_16 = arith.constant 0 : index
    %c0_17 = arith.constant 0 : index
    %c0_18 = arith.constant 0 : index
    %c0_19 = arith.constant 0 : index
    %51 = vector.load %arg7[%c0_16, %c0_17, %c0_18, %c0_19] : memref<1x6x16x16xf32, #tpu.memory_space<vmem>>, vector<1x1x16x16xf32>
    %52 = vector.shape_cast %51 : vector<1x1x16x16xf32> to vector<16x16xf32>
    %53 = vector.shape_cast %50 : vector<16x16xf32> to vector<1x1x16x16xf32>
    tpu.vector_store %arg7[%c0_16, %c0_17, %c0_18, %c0_19], %53 {strides = array<i32>} : memref<1x6x16x16xf32, #tpu.memory_space<vmem>>, vector<1x1x16x16xf32>,
    %c1 = arith.constant 1 : index
    %c0_20 = arith.constant 0 : index
    %c0_21 = arith.constant 0 : index
    %54 = vector.load %arg6[%c1, %c0_20, %c0_21] : memref<6x16x16xf32, #tpu.memory_space<vmem>>, vector<1x16x16xf32>
    %55 = vector.shape_cast %54 : vector<1x16x16xf32> to vector<16x16xf32>
    %56 = vector.extract_strided_slice %15 {offsets = [7, 7], sizes = [16, 16], strides = [1, 1]} : vector<36x36xf32> to vector<16x16xf32>
    %57 = vector.extract_strided_slice %15 {offsets = [12, 12], sizes = [16, 16], strides = [1, 1]} : vector<36x36xf32> to vector<16x16xf32>
    %58 = arith.addf %56, %57 : vector<16x16xf32>
    %59 = vector.extract_strided_slice %15 {offsets = [7, 12], sizes = [16, 16], strides = [1, 1]} : vector<36x36xf32> to vector<16x16xf32>
    %60 = arith.subf %58, %59 : vector<16x16xf32>
    %61 = vector.extract_strided_slice %15 {offsets = [12, 7], sizes = [16, 16], strides = [1, 1]} : vector<36x36xf32> to vector<16x16xf32>
    %62 = arith.subf %60, %61 : vector<16x16xf32>
    %63 = arith.mulf %62, %55 : vector<16x16xf32>
    %64 = vector.extract_strided_slice %17 {offsets = [7, 7], sizes = [16, 16], strides = [1, 1]} : vector<36x36xf32> to vector<16x16xf32>
    %65 = vector.extract_strided_slice %17 {offsets = [12, 12], sizes = [16, 16], strides = [1, 1]} : vector<36x36xf32> to vector<16x16xf32>
    %66 = arith.addf %64, %65 : vector<16x16xf32>
    %67 = vector.extract_strided_slice %17 {offsets = [7, 12], sizes = [16, 16], strides = [1, 1]} : vector<36x36xf32> to vector<16x16xf32>
    %68 = arith.subf %66, %67 : vector<16x16xf32>
    %69 = vector.extract_strided_slice %17 {offsets = [12, 7], sizes = [16, 16], strides = [1, 1]} : vector<36x36xf32> to vector<16x16xf32>
    %70 = arith.subf %68, %69 : vector<16x16xf32>
    %71 = arith.mulf %70, %55 : vector<16x16xf32>
    %72 = arith.mulf %63, %63 : vector<16x16xf32>
    %73 = arith.subf %71, %72 : vector<16x16xf32>
    %cst_22 = arith.constant 9.99999997E-7 : f32
    %74 = vector.broadcast %cst_22 : f32 to vector<16x16xf32>
    %75 = arith.maximumf %73, %74 : vector<16x16xf32>
    %76 = math.sqrt %75 : vector<16x16xf32>
    %77 = vector.broadcast %8 : f32 to vector<16x16xf32>
    %78 = arith.addf %63, %77 : vector<16x16xf32>
    %c1_23 = arith.constant 1 : index
    %79 = memref.load %arg1[%c1_23] : memref<6xf32, #tpu.memory_space<smem>>
    %c1_24 = arith.constant 1 : index
    %80 = memref.load %arg2[%c1_24] : memref<6xf32, #tpu.memory_space<smem>>
    %81 = vector.broadcast %79 : f32 to vector<16x16xf32>
    %82 = arith.mulf %78, %81 : vector<16x16xf32>
    %83 = arith.mulf %78, %76 : vector<16x16xf32>
    %84 = vector.broadcast %80 : f32 to vector<16x16xf32>
    %85 = arith.mulf %84, %83 : vector<16x16xf32>
    %86 = arith.addf %82, %85 : vector<16x16xf32>
    %c0_25 = arith.constant 0 : index
    %c1_26 = arith.constant 1 : index
    %c0_27 = arith.constant 0 : index
    %c0_28 = arith.constant 0 : index
    %87 = vector.load %arg7[%c0_25, %c1_26, %c0_27, %c0_28] : memref<1x6x16x16xf32, #tpu.memory_space<vmem>>, vector<1x1x16x16xf32>
    %88 = vector.shape_cast %87 : vector<1x1x16x16xf32> to vector<16x16xf32>
    %89 = vector.shape_cast %86 : vector<16x16xf32> to vector<1x1x16x16xf32>
    tpu.vector_store %arg7[%c0_25, %c1_26, %c0_27, %c0_28], %89 {strides = array<i32>} : memref<1x6x16x16xf32, #tpu.memory_space<vmem>>, vector<1x1x16x16xf32>,
    %c2 = arith.constant 2 : index
    %c0_29 = arith.constant 0 : index
    %c0_30 = arith.constant 0 : index
    %90 = vector.load %arg6[%c2, %c0_29, %c0_30] : memref<6x16x16xf32, #tpu.memory_space<vmem>>, vector<1x16x16xf32>
    %91 = vector.shape_cast %90 : vector<1x16x16xf32> to vector<16x16xf32>
    %92 = vector.extract_strided_slice %15 {offsets = [6, 6], sizes = [16, 16], strides = [1, 1]} : vector<36x36xf32> to vector<16x16xf32>
    %93 = vector.extract_strided_slice %15 {offsets = [13, 13], sizes = [16, 16], strides = [1, 1]} : vector<36x36xf32> to vector<16x16xf32>
    %94 = arith.addf %92, %93 : vector<16x16xf32>
    %95 = vector.extract_strided_slice %15 {offsets = [6, 13], sizes = [16, 16], strides = [1, 1]} : vector<36x36xf32> to vector<16x16xf32>
    %96 = arith.subf %94, %95 : vector<16x16xf32>
    %97 = vector.extract_strided_slice %15 {offsets = [13, 6], sizes = [16, 16], strides = [1, 1]} : vector<36x36xf32> to vector<16x16xf32>
    %98 = arith.subf %96, %97 : vector<16x16xf32>
    %99 = arith.mulf %98, %91 : vector<16x16xf32>
    %100 = vector.extract_strided_slice %17 {offsets = [6, 6], sizes = [16, 16], strides = [1, 1]} : vector<36x36xf32> to vector<16x16xf32>
    %101 = vector.extract_strided_slice %17 {offsets = [13, 13], sizes = [16, 16], strides = [1, 1]} : vector<36x36xf32> to vector<16x16xf32>
    %102 = arith.addf %100, %101 : vector<16x16xf32>
    %103 = vector.extract_strided_slice %17 {offsets = [6, 13], sizes = [16, 16], strides = [1, 1]} : vector<36x36xf32> to vector<16x16xf32>
    %104 = arith.subf %102, %103 : vector<16x16xf32>
    %105 = vector.extract_strided_slice %17 {offsets = [13, 6], sizes = [16, 16], strides = [1, 1]} : vector<36x36xf32> to vector<16x16xf32>
    %106 = arith.subf %104, %105 : vector<16x16xf32>
    %107 = arith.mulf %106, %91 : vector<16x16xf32>
    %108 = arith.mulf %99, %99 : vector<16x16xf32>
    %109 = arith.subf %107, %108 : vector<16x16xf32>
    %cst_31 = arith.constant 9.99999997E-7 : f32
    %110 = vector.broadcast %cst_31 : f32 to vector<16x16xf32>
    %111 = arith.maximumf %109, %110 : vector<16x16xf32>
    %112 = math.sqrt %111 : vector<16x16xf32>
    %113 = vector.broadcast %8 : f32 to vector<16x16xf32>
    %114 = arith.addf %99, %113 : vector<16x16xf32>
    %c2_32 = arith.constant 2 : index
    %115 = memref.load %arg1[%c2_32] : memref<6xf32, #tpu.memory_space<smem>>
    %c2_33 = arith.constant 2 : index
    %116 = memref.load %arg2[%c2_33] : memref<6xf32, #tpu.memory_space<smem>>
    %117 = vector.broadcast %115 : f32 to vector<16x16xf32>
    %118 = arith.mulf %114, %117 : vector<16x16xf32>
    %119 = arith.mulf %114, %112 : vector<16x16xf32>
    %120 = vector.broadcast %116 : f32 to vector<16x16xf32>
    %121 = arith.mulf %120, %119 : vector<16x16xf32>
    %122 = arith.addf %118, %121 : vector<16x16xf32>
    %c0_34 = arith.constant 0 : index
    %c2_35 = arith.constant 2 : index
    %c0_36 = arith.constant 0 : index
    %c0_37 = arith.constant 0 : index
    %123 = vector.load %arg7[%c0_34, %c2_35, %c0_36, %c0_37] : memref<1x6x16x16xf32, #tpu.memory_space<vmem>>, vector<1x1x16x16xf32>
    %124 = vector.shape_cast %123 : vector<1x1x16x16xf32> to vector<16x16xf32>
    %125 = vector.shape_cast %122 : vector<16x16xf32> to vector<1x1x16x16xf32>
    tpu.vector_store %arg7[%c0_34, %c2_35, %c0_36, %c0_37], %125 {strides = array<i32>} : memref<1x6x16x16xf32, #tpu.memory_space<vmem>>, vector<1x1x16x16xf32>,
    %c3 = arith.constant 3 : index
    %c0_38 = arith.constant 0 : index
    %c0_39 = arith.constant 0 : index
    %126 = vector.load %arg6[%c3, %c0_38, %c0_39] : memref<6x16x16xf32, #tpu.memory_space<vmem>>, vector<1x16x16xf32>
    %127 = vector.shape_cast %126 : vector<1x16x16xf32> to vector<16x16xf32>
    %128 = vector.extract_strided_slice %15 {offsets = [4, 4], sizes = [16, 16], strides = [1, 1]} : vector<36x36xf32> to vector<16x16xf32>
    %129 = vector.extract_strided_slice %15 {offsets = [15, 15], sizes = [16, 16], strides = [1, 1]} : vector<36x36xf32> to vector<16x16xf32>
    %130 = arith.addf %128, %129 : vector<16x16xf32>
    %131 = vector.extract_strided_slice %15 {offsets = [4, 15], sizes = [16, 16], strides = [1, 1]} : vector<36x36xf32> to vector<16x16xf32>
    %132 = arith.subf %130, %131 : vector<16x16xf32>
    %133 = vector.extract_strided_slice %15 {offsets = [15, 4], sizes = [16, 16], strides = [1, 1]} : vector<36x36xf32> to vector<16x16xf32>
    %134 = arith.subf %132, %133 : vector<16x16xf32>
    %135 = arith.mulf %134, %127 : vector<16x16xf32>
    %136 = vector.extract_strided_slice %17 {offsets = [4, 4], sizes = [16, 16], strides = [1, 1]} : vector<36x36xf32> to vector<16x16xf32>
    %137 = vector.extract_strided_slice %17 {offsets = [15, 15], sizes = [16, 16], strides = [1, 1]} : vector<36x36xf32> to vector<16x16xf32>
    %138 = arith.addf %136, %137 : vector<16x16xf32>
    %139 = vector.extract_strided_slice %17 {offsets = [4, 15], sizes = [16, 16], strides = [1, 1]} : vector<36x36xf32> to vector<16x16xf32>
    %140 = arith.subf %138, %139 : vector<16x16xf32>
    %141 = vector.extract_strided_slice %17 {offsets = [15, 4], sizes = [16, 16], strides = [1, 1]} : vector<36x36xf32> to vector<16x16xf32>
    %142 = arith.subf %140, %141 : vector<16x16xf32>
    %143 = arith.mulf %142, %127 : vector<16x16xf32>
    %144 = arith.mulf %135, %135 : vector<16x16xf32>
    %145 = arith.subf %143, %144 : vector<16x16xf32>
    %cst_40 = arith.constant 9.99999997E-7 : f32
    %146 = vector.broadcast %cst_40 : f32 to vector<16x16xf32>
    %147 = arith.maximumf %145, %146 : vector<16x16xf32>
    %148 = math.sqrt %147 : vector<16x16xf32>
    %149 = vector.broadcast %8 : f32 to vector<16x16xf32>
    %150 = arith.addf %135, %149 : vector<16x16xf32>
    %c3_41 = arith.constant 3 : index
    %151 = memref.load %arg1[%c3_41] : memref<6xf32, #tpu.memory_space<smem>>
    %c3_42 = arith.constant 3 : index
    %152 = memref.load %arg2[%c3_42] : memref<6xf32, #tpu.memory_space<smem>>
    %153 = vector.broadcast %151 : f32 to vector<16x16xf32>
    %154 = arith.mulf %150, %153 : vector<16x16xf32>
    %155 = arith.mulf %150, %148 : vector<16x16xf32>
    %156 = vector.broadcast %152 : f32 to vector<16x16xf32>
    %157 = arith.mulf %156, %155 : vector<16x16xf32>
    %158 = arith.addf %154, %157 : vector<16x16xf32>
    %c0_43 = arith.constant 0 : index
    %c3_44 = arith.constant 3 : index
    %c0_45 = arith.constant 0 : index
    %c0_46 = arith.constant 0 : index
    %159 = vector.load %arg7[%c0_43, %c3_44, %c0_45, %c0_46] : memref<1x6x16x16xf32, #tpu.memory_space<vmem>>, vector<1x1x16x16xf32>
    %160 = vector.shape_cast %159 : vector<1x1x16x16xf32> to vector<16x16xf32>
    %161 = vector.shape_cast %158 : vector<16x16xf32> to vector<1x1x16x16xf32>
    tpu.vector_store %arg7[%c0_43, %c3_44, %c0_45, %c0_46], %161 {strides = array<i32>} : memref<1x6x16x16xf32, #tpu.memory_space<vmem>>, vector<1x1x16x16xf32>,
    %c4 = arith.constant 4 : index
    %c0_47 = arith.constant 0 : index
    %c0_48 = arith.constant 0 : index
    %162 = vector.load %arg6[%c4, %c0_47, %c0_48] : memref<6x16x16xf32, #tpu.memory_space<vmem>>, vector<1x16x16xf32>
    %163 = vector.shape_cast %162 : vector<1x16x16xf32> to vector<16x16xf32>
    %164 = vector.extract_strided_slice %15 {offsets = [2, 2], sizes = [16, 16], strides = [1, 1]} : vector<36x36xf32> to vector<16x16xf32>
    %165 = vector.extract_strided_slice %15 {offsets = [17, 17], sizes = [16, 16], strides = [1, 1]} : vector<36x36xf32> to vector<16x16xf32>
    %166 = arith.addf %164, %165 : vector<16x16xf32>
    %167 = vector.extract_strided_slice %15 {offsets = [2, 17], sizes = [16, 16], strides = [1, 1]} : vector<36x36xf32> to vector<16x16xf32>
    %168 = arith.subf %166, %167 : vector<16x16xf32>
    %169 = vector.extract_strided_slice %15 {offsets = [17, 2], sizes = [16, 16], strides = [1, 1]} : vector<36x36xf32> to vector<16x16xf32>
    %170 = arith.subf %168, %169 : vector<16x16xf32>
    %171 = arith.mulf %170, %163 : vector<16x16xf32>
    %172 = vector.extract_strided_slice %17 {offsets = [2, 2], sizes = [16, 16], strides = [1, 1]} : vector<36x36xf32> to vector<16x16xf32>
    %173 = vector.extract_strided_slice %17 {offsets = [17, 17], sizes = [16, 16], strides = [1, 1]} : vector<36x36xf32> to vector<16x16xf32>
    %174 = arith.addf %172, %173 : vector<16x16xf32>
    %175 = vector.extract_strided_slice %17 {offsets = [2, 17], sizes = [16, 16], strides = [1, 1]} : vector<36x36xf32> to vector<16x16xf32>
    %176 = arith.subf %174, %175 : vector<16x16xf32>
    %177 = vector.extract_strided_slice %17 {offsets = [17, 2], sizes = [16, 16], strides = [1, 1]} : vector<36x36xf32> to vector<16x16xf32>
    %178 = arith.subf %176, %177 : vector<16x16xf32>
    %179 = arith.mulf %178, %163 : vector<16x16xf32>
    %180 = arith.mulf %171, %171 : vector<16x16xf32>
    %181 = arith.subf %179, %180 : vector<16x16xf32>
    %cst_49 = arith.constant 9.99999997E-7 : f32
    %182 = vector.broadcast %cst_49 : f32 to vector<16x16xf32>
    %183 = arith.maximumf %181, %182 : vector<16x16xf32>
    %184 = math.sqrt %183 : vector<16x16xf32>
    %185 = vector.broadcast %8 : f32 to vector<16x16xf32>
    %186 = arith.addf %171, %185 : vector<16x16xf32>
    %c4_50 = arith.constant 4 : index
    %187 = memref.load %arg1[%c4_50] : memref<6xf32, #tpu.memory_space<smem>>
    %c4_51 = arith.constant 4 : index
    %188 = memref.load %arg2[%c4_51] : memref<6xf32, #tpu.memory_space<smem>>
    %189 = vector.broadcast %187 : f32 to vector<16x16xf32>
    %190 = arith.mulf %186, %189 : vector<16x16xf32>
    %191 = arith.mulf %186, %184 : vector<16x16xf32>
    %192 = vector.broadcast %188 : f32 to vector<16x16xf32>
    %193 = arith.mulf %192, %191 : vector<16x16xf32>
    %194 = arith.addf %190, %193 : vector<16x16xf32>
    %c0_52 = arith.constant 0 : index
    %c4_53 = arith.constant 4 : index
    %c0_54 = arith.constant 0 : index
    %c0_55 = arith.constant 0 : index
    %195 = vector.load %arg7[%c0_52, %c4_53, %c0_54, %c0_55] : memref<1x6x16x16xf32, #tpu.memory_space<vmem>>, vector<1x1x16x16xf32>
    %196 = vector.shape_cast %195 : vector<1x1x16x16xf32> to vector<16x16xf32>
    %197 = vector.shape_cast %194 : vector<16x16xf32> to vector<1x1x16x16xf32>
    tpu.vector_store %arg7[%c0_52, %c4_53, %c0_54, %c0_55], %197 {strides = array<i32>} : memref<1x6x16x16xf32, #tpu.memory_space<vmem>>, vector<1x1x16x16xf32>,
    %c5 = arith.constant 5 : index
    %c0_56 = arith.constant 0 : index
    %c0_57 = arith.constant 0 : index
    %198 = vector.load %arg6[%c5, %c0_56, %c0_57] : memref<6x16x16xf32, #tpu.memory_space<vmem>>, vector<1x16x16xf32>
    %199 = vector.shape_cast %198 : vector<1x16x16xf32> to vector<16x16xf32>
    %200 = vector.extract_strided_slice %15 {offsets = [0, 0], sizes = [16, 16], strides = [1, 1]} : vector<36x36xf32> to vector<16x16xf32>
    %201 = vector.extract_strided_slice %15 {offsets = [19, 19], sizes = [16, 16], strides = [1, 1]} : vector<36x36xf32> to vector<16x16xf32>
    %202 = arith.addf %200, %201 : vector<16x16xf32>
    %203 = vector.extract_strided_slice %15 {offsets = [0, 19], sizes = [16, 16], strides = [1, 1]} : vector<36x36xf32> to vector<16x16xf32>
    %204 = arith.subf %202, %203 : vector<16x16xf32>
    %205 = vector.extract_strided_slice %15 {offsets = [19, 0], sizes = [16, 16], strides = [1, 1]} : vector<36x36xf32> to vector<16x16xf32>
    %206 = arith.subf %204, %205 : vector<16x16xf32>
    %207 = arith.mulf %206, %199 : vector<16x16xf32>
    %208 = vector.extract_strided_slice %17 {offsets = [0, 0], sizes = [16, 16], strides = [1, 1]} : vector<36x36xf32> to vector<16x16xf32>
    %209 = vector.extract_strided_slice %17 {offsets = [19, 19], sizes = [16, 16], strides = [1, 1]} : vector<36x36xf32> to vector<16x16xf32>
    %210 = arith.addf %208, %209 : vector<16x16xf32>
    %211 = vector.extract_strided_slice %17 {offsets = [0, 19], sizes = [16, 16], strides = [1, 1]} : vector<36x36xf32> to vector<16x16xf32>
    %212 = arith.subf %210, %211 : vector<16x16xf32>
    %213 = vector.extract_strided_slice %17 {offsets = [19, 0], sizes = [16, 16], strides = [1, 1]} : vector<36x36xf32> to vector<16x16xf32>
    %214 = arith.subf %212, %213 : vector<16x16xf32>
    %215 = arith.mulf %214, %199 : vector<16x16xf32>
    %216 = arith.mulf %207, %207 : vector<16x16xf32>
    %217 = arith.subf %215, %216 : vector<16x16xf32>
    %cst_58 = arith.constant 9.99999997E-7 : f32
    %218 = vector.broadcast %cst_58 : f32 to vector<16x16xf32>
    %219 = arith.maximumf %217, %218 : vector<16x16xf32>
    %220 = math.sqrt %219 : vector<16x16xf32>
    %221 = vector.broadcast %8 : f32 to vector<16x16xf32>
    %222 = arith.addf %207, %221 : vector<16x16xf32>
    %c5_59 = arith.constant 5 : index
    %223 = memref.load %arg1[%c5_59] : memref<6xf32, #tpu.memory_space<smem>>
    %c5_60 = arith.constant 5 : index
    %224 = memref.load %arg2[%c5_60] : memref<6xf32, #tpu.memory_space<smem>>
    %225 = vector.broadcast %223 : f32 to vector<16x16xf32>
    %226 = arith.mulf %222, %225 : vector<16x16xf32>
    %227 = arith.mulf %222, %220 : vector<16x16xf32>
    %228 = vector.broadcast %224 : f32 to vector<16x16xf32>
    %229 = arith.mulf %228, %227 : vector<16x16xf32>
    %230 = arith.addf %226, %229 : vector<16x16xf32>
    %c0_61 = arith.constant 0 : index
    %c5_62 = arith.constant 5 : index
    %c0_63 = arith.constant 0 : index
    %c0_64 = arith.constant 0 : index
    %231 = vector.load %arg7[%c0_61, %c5_62, %c0_63, %c0_64] : memref<1x6x16x16xf32, #tpu.memory_space<vmem>>, vector<1x1x16x16xf32>
    %232 = vector.shape_cast %231 : vector<1x1x16x16xf32> to vector<16x16xf32>
    %233 = vector.shape_cast %230 : vector<16x16xf32> to vector<1x1x16x16xf32>
    tpu.vector_store %arg7[%c0_61, %c5_62, %c0_63, %c0_64], %233 {strides = array<i32>} : memref<1x6x16x16xf32, #tpu.memory_space<vmem>>, vector<1x1x16x16xf32>,
    return
  }
  func.func @transform_0(%arg0: i32) -> i32 {
    %c0_i32 = arith.constant 0 : i32
    %c0_i32_0 = arith.constant 0 : i32
    return %c0_i32 : i32
  }
  func.func @transform_1(%arg0: i32) -> i32 {
    %c0_i32 = arith.constant 0 : i32
    %c0_i32_0 = arith.constant 0 : i32
    return %c0_i32 : i32
  }
  func.func @transform_2(%arg0: i32) -> (i32, i32, i32) {
    %c0_i32 = arith.constant 0 : i32
    %c0_i32_0 = arith.constant 0 : i32
    %c0_i32_1 = arith.constant 0 : i32
    return %arg0, %c0_i32, %c0_i32_0 : i32, i32, i32
  }
  func.func @transform_3(%arg0: i32) -> (i32, i32) {
    %c0_i32 = arith.constant 0 : i32
    %c0_i32_0 = arith.constant 0 : i32
    %c0_i32_1 = arith.constant 0 : i32
    return %c0_i32, %c0_i32_0 : i32, i32
  }
  func.func @transform_4(%arg0: i32) -> (i32, i32) {
    %c0_i32 = arith.constant 0 : i32
    %c0_i32_0 = arith.constant 0 : i32
    %c0_i32_1 = arith.constant 0 : i32
    return %c0_i32, %c0_i32_0 : i32, i32
  }
  func.func @transform_5(%arg0: i32) -> (i32, i32, i32) {
    %c0_i32 = arith.constant 0 : i32
    %c0_i32_0 = arith.constant 0 : i32
    %c0_i32_1 = arith.constant 0 : i32
    %c0_i32_2 = arith.constant 0 : i32
    return %c0_i32, %c0_i32_0, %c0_i32_1 : i32, i32, i32
  }
  func.func @transform_6(%arg0: i32) -> (i32, i32, i32, i32) {
    %c0_i32 = arith.constant 0 : i32
    %c0_i32_0 = arith.constant 0 : i32
    %c0_i32_1 = arith.constant 0 : i32
    %c0_i32_2 = arith.constant 0 : i32
    return %arg0, %c0_i32, %c0_i32_0, %c0_i32_1 : i32, i32, i32, i32
  }
}

</mosaic_0001>

<bundles_post_ra>
// kernel: sauvola_multi_window.1
= control target key start
LH: loop header
LB: loop body
LE: loop exit
PB: predicated region body
PF: predicated region fallthrough
CT: control target
= control target key end

     0   :  { %11 = vsyncpa [#allocation3], 0  ;;  %s2834_s0 = inlined_call_operand.vmem [shape: f32[6], index: 0, kind: input, shape index: {}]   ;;  %s2835_s1 = inlined_call_operand.vmem [shape: f32[6], index: 1, kind: input, shape index: {}]   ;;  %s2836_s2 = inlined_call_operand.vmem [shape: f32[8,16,16], index: 2, kind: input, shape index: {}]   ;;  %s2837_s3 = inlined_call_operand.vmem [shape: f32[36,16], index: 3, kind: input, shape index: {}]   ;;  %s2838_s4 = inlined_call_operand.vmem [shape: f32[16,36], index: 4, kind: input, shape index: {}]   ;;  %s2839_s5 = inlined_call_operand.vmem [shape: f32[6,16,16], index: 5, kind: input, shape index: {}]   ;;  %s2840_s6 = inlined_call_operand.vmem [shape: f32[8,6,16,16], index: 6, kind: output, shape index: {}]  }
   0x1   :  { %12 = vsyncpa [#allocation5], 0  ;;  %s1823_s21 = smov 0  }
   0x2 LB: > { %s1829_s22 = sadd.s32 4294967295, %s1767_s21   ;;  %p1509_p0 = scmp.ge.s32.totalorder %s1767_s21, 1  ;;  %s1767_s21 = sphi %s1823_s21, %s18_s21  }
   0x3   : > { %p180_p1 = scmp.lt.s32.totalorder %s1767_s21, 9  ;;  %s193_s25 = sshll.u32 %s2834_s0, 4  ;;  %s194_s25 = int_to_ptr.vmem [resolvable:$true] %s193_s25 }
   0x4   : > { %p2841_p3 = scmp.eq.s32.totalorder %s1829_s22, 0  ;;  %s204_s29 = sshll.u32 %s2835_s1, 4  ;;  %s205_s29 = int_to_ptr.vmem [resolvable:$true] %s204_s29 }
   0x5   : > { %p1836_p2 = pnand %p1509_p0, %p180_p1  ;;  %s1723_s7 = scalar_lea.vmem %s194_s25, 16 }
   0x6   : > { %p1724_p6 = scmp.ne.s32.totalorder %s194_s25, %s1723_s7  ;;  %p1731_p10 = scmp.lt.s32.totalorder %s194_s25, %s194_s25 }
   0x7   : > { %s2861_s26 = scalar_select %p1836_p2, 1, 0 }
   0x8   : > { %p1653_p4 = pneg %p1836_p2  ;;  %p1732_p11 = scmp.lt.s32.totalorder %s1723_s7, %s1723_s7 }
   0xa   : > { %p1848_p5 = pnand %p2841_p3, %p1653_p4  ;;  %p1733_p12 = por %p1732_p11, %p1731_p10 }
   0xc   : > { %p1725_p7 = pneg %p1848_p5 }
   0xe   : > { %p1726_p8 = pnand %p1725_p7, %p1724_p6 }
  0x10   : > { %p1727_p9 = pneg %p1726_p8 }
  0x12   : > { %p1734_p13 = pnand %p1733_p12, %p1727_p9 }
  0x14   : > { %1737 = shalt.err (!%p1734_p13)
}
  0x15   : > { %s1769_s8 = smov [#allocation2]   ;;  %s1738_s9 = scalar_lea.vmem %s205_s29, 16 }
  0x16   : > { %1656 = dma.vmem_to_smem (!%p1848_p5), %s194_s25, 16, %s1769_s8, [#allocation3]  }
  0x17   : > { %p1739_p0 = scmp.ne.s32.totalorder %s205_s29, %s1738_s9  ;;  %p1746_p3 = scmp.lt.s32.totalorder %s205_s29, %s205_s29 }
  0x18   : > { %p1747_p2 = scmp.lt.s32.totalorder %s1738_s9, %s1738_s9 }
  0x19   : > { %p1741_p1 = pnand %p1739_p0, %p1725_p7 }
  0x1a   : > { %p1748_p6 = por %p1747_p2, %p1746_p3 }
  0x1b   : > { %p1742_p4 = pneg %p1741_p1 }
  0x1d   : > { %p1749_p8 = pnand %p1748_p6, %p1742_p4 }
  0x1f   : > { %1752 = shalt.err (!%p1749_p8)
}
  0x20   : > { %s1770_s10 = smov [#allocation4]   ;;  %p2863_p9 = scmp.ne.s32.totalorder %s2861_s26, 0 }
  0x21   : > { %1659 = dma.vmem_to_smem (!%p1848_p5), %s205_s29, 16, %s1770_s10, [#allocation5]  }
  0x22   : > { %234 = sbr.rel (%p2863_p9) target bundleno = 1045 (0x415), region = 44 }
  0x27   : > { %p2864_p10 = scmp.eq.s32.totalorder %s1829_s22, 0 }
  0x29   : > { %1758 = dma.done.wait (%p2864_p10), [#allocation3], 16   ;;  %p2865_p11 = pmov %p2864_p10 }
  0x2a   : > { %p2866_p7 = pmov %p2864_p10 }
  0x2b   : > { %1760 = vsyncadd (%p2865_p11), [#allocation3], 4294967280 }
  0x2c   : > { %1762 = dma.done.wait (%p2866_p7), [#allocation5], 16   ;;  %p2867_p2 = pmov %p2866_p7 }
  0x2e   : > { %1764 = vsyncadd (%p2867_p2), [#allocation5], 4294967280 }
  0x2f   : > { %244 = sfence }
  0x30   : > { %p269_p3 = scmp.lt.s32.totalorder %s1829_s22, 7  ;;  %vm288_vm0 = vcmask 130048   ;;  %v287_v5 = vld [vmem:[%s2838_s4 + $0x8] sm:$0xff]  ;;  %v286_v6 = vld [vmem:[%s2838_s4] sm:$0xff]  ;;  %v1771_v19 = vmov 0.0   ;;  %vm1772_vm1 = vmmov 0  }
  0x31   : > { %1590 = vmatprep.subr.mxu0 %v287_v5  ;;  %1638 = vmatprep.subr.mxu1 %v287_v5  ;;  %v601_v20 = vld [vmem:[%s2839_s5] sm:$0xff]  ;;  %v1533_v21 = vld [vmem:[%s2839_s5 + $0x10] sm:$0xff]  ;;  %s1773_s27 = smov 8   ;;  %v1534_v23 = vld [vmem:[%s2839_s5 + $0x18] sm:$0xff]  ;;  %s1774_s12 = smov 7   ;;  %vm758_vm2 = vcmask 1046528  }
  0x32   : > { %s2922_s22 = smov (!%p269_p3, %s1829_s22), 7  ;;  %1591 = vmatpush3.msra.mxu0 %v287_v5  ;;  %1640 = vmatpush3.msra.mxu1 %v287_v5  ;;  %v759_v22 = vrot.slane %v1533_v21, 1  ;;  %v1540_v24 = vld [vmem:[%s2839_s5 + $0x20] sm:$0xff]  ;;  %v1541_v25 = vld [vmem:[%s2839_s5 + $0x28] sm:$0xff]  ;;  %v760_v27 = vrot.slane %v1534_v23, 1  ;;  %vm921_vm3 = vcmask 1045504  }
  0x33   : > { %s1569_s11 = sshll.u32 %s2922_s22, 4  ;;  %1592 = vmatprep.subr.mxu0 %v286_v6  ;;  %1639 = vmatprep.subr.mxu1 %v286_v6  ;;  %v602_v26 = vld [vmem:[%s2839_s5 + $0x8] sm:$0xff]  ;;  %v922_v28 = vrot.slane %v1540_v24, 2  ;;  %v923_v29 = vrot.slane %v1541_v25, 2  ;;  %v1547_v32 = vld [vmem:[%s2839_s5 + $0x30] sm:$0xff]  ;;  %s1775_s15 = smov 6  }
  0x34   : > { %s273_s14 = scalar_lea.vmem %s2836_s2, %s1569_s11  ;;  %1593 = vmatpush3.msra.mxu0 %v286_v6  ;;  %1641 = vmatpush3.msra.mxu1 %v286_v6  ;;  %v761_v30 = vsel %vm758_vm2, %v759_v22, %v760_v27  ;;  %v1076_v33 = vrot.slane %v1547_v32, 4  ;;  %v1548_v34 = vld [vmem:[%s2839_s5 + $0x38] sm:$0xff]  ;;  %s1776_s18 = smov 4   ;;  %vm1075_vm4 = vcmask 1043456   ;;  %v1925_v37 = vld [vmem:[%s2839_s5 + $0x40] sm:$0xff]  ;;  %v282_v44 = vld [vmem:[%s2837_s3 + $0x8] sm:$0xff] }
  0x35   : > { %v279_v0 = vld [vmem:[%s273_s14] sm:$0xff]  ;;  %v280_v1 = vld [vmem:[%s273_s14 + $0x8] sm:$0xff]  ;;  %1600 = vmatprep.subr.mxu1 %v1771_v19  ;;  %1619 = vmatprep.subr.mxu0 %v1771_v19  ;;  %v924_v31 = vsel %vm921_vm3, %v922_v28, %v923_v29  ;;  %v1077_v35 = vrot.slane %v1548_v34, 4  ;;  %v1227_v38 = vrot.slane %v1925_v37, 6  ;;  %s1777_s23 = smov 2   ;;  %v283_v45 = vld [vmem:[%s2837_s3 + $0x10] sm:$0xff] }
  0x36   : > { %v289_v2 = vsel %vm288_vm0, %v279_v0, 0.0  ;;  %v290_v3 = vsel %vm288_vm0, %v280_v1, 0.0  ;;  %634 = vrot.lane.b32.xlu1 %v601_v20, %s1773_s27  ;;  %v281_v40 = vld [vmem:[%s2837_s3] sm:$0xff]  ;;  %v284_v46 = vld [vmem:[%s2837_s3 + $0x18] sm:$0xff]  ;;  %s1778_s10 = smov 123   ;;  %s1779_s11 = smov 121  }
  0x37   : > { %v291_v4 = vadd.f32 %v290_v3, %v289_v2  ;;  %v1078_v36 = vsel %vm1075_vm4, %v1076_v33, %v1077_v35  ;;  %v285_v47 = vld [vmem:[%s2837_s3 + $0x20] sm:$0xf]  ;;  %s1781_s13 = smov 117   ;;  %s1782_s14 = smov 125   ;;  %vm883_vm5 = vcmask 1040384   ;;  %vm606_vm6 = vcmask 1044480  }
  0x38   : > { %vm719_vm7 = vcmask 1042432   ;;  %vm1226_vm8 = vcmask 1041408   ;;  %s1783_s17 = smov 109   ;;  %s2312_s24 = sld [smem:[#allocation2]] }
  0x39   : > { %292 = vadd.xlane.f32.xlu0 %v291_v4  ;;  %s1543_s25 = sld [smem:[#allocation4 + $0x2]]  ;;  %s1784_s30 = smov 122  }
  0x3a   : > { %636 = vrot.lane.b32.xlu1 %v602_v26, %s1773_s27  ;;  %s2396_s26 = sld [smem:[#allocation2 + $0x3]]  ;;  %s1785_s7 = smov 126  }
  0x3b   : > { %s2403_s27 = sld [smem:[#allocation4 + $0x4]] }
  0x3c   : > { %s2410_s28 = sld [smem:[#allocation4]] }
  0x3d   : > { %s2415_s29 = sld [smem:[#allocation4 + $0x3]] }
  0x3e   : > { %764 = vrot.lane.b32.xlu1 %v761_v30, %s1774_s12 }
  0x42   : > { %925 = vrot.lane.b32.xlu1 %v922_v28, %s1775_s15 }
  0x46   : > { %929 = vrot.lane.b32.xlu1 %v923_v29, %s1775_s15 }
  0x4a   : > { %1081 = vrot.lane.b32.xlu1 %v1078_v36, %s1776_s18 }
  0x4e   : > { %1230 = vrot.lane.b32.xlu1 %v1227_v38, %s1777_s23 }
  0x4f   : > { %762 = vrot.lane.b32.xlu0 %v759_v22, %s1774_s12 }
  0x53   : > { %766 = vrot.lane.b32.xlu0 %v760_v27, %s1774_s12  ;;  %s1780_s12 = smov 113  }
  0x57   : > { %927 = vrot.lane.b32.xlu0 %v924_v31, %s1775_s15 }
  0x5b   : > { %1079 = vrot.lane.b32.xlu0 %v1076_v33, %s1776_s18 }
  0x5f   : > { %1083 = vrot.lane.b32.xlu0 %v1077_v35, %s1776_s18  ;;  %s1535_s18 = sld [smem:[#allocation2 + $0x1]] }
  0xa8   : > { %v2124_v29 = vpop.permute.xlu1 %634 }
  0xac   : > { %v2144_v33 = vpop.permute.xlu1 %636 }
  0xc2   : > { %v293_v7 = vpop.xlane.xlu0 %292 }
  0xc3   : > { %v294_v8 = vrot.slane %v293_v7, 4 }
  0xc5   : > { %v295_v9 = vadd.f32 %v294_v8, %v293_v7 }
  0xc6   : > { %v2154_v36 = vpop.permute.xlu0 %762 }
  0xc7   : > { %v296_v10 = vrot.slane %v295_v9, 2 }
  0xc9   : > { %v297_v11 = vadd.f32 %v296_v10, %v295_v9 }
  0xcb   : > { %v298_v12 = vrot.slane %v297_v11, 1 }
  0xcd   : > { %v299_v13 = vadd.f32 %v298_v12, %v297_v11 }
  0xcf   : > { %1643 = vpush %v299_v13 }
 0x100   : > { %s1644_s19 = spop %1643 }
 0x101   : > { %s303_s20 = smul.f32 0.00390625, %s1644_s19  ;;  %s1542_s19 = sld [smem:[#allocation2 + $0x2]] }
 0x103   : > { %v1884_v14 = vstv %s303_s20  ;;  %s1556_s20 = sld [smem:[#allocation2 + $0x4]] }
 0x104   : > { %v305_v15 = vsub.f32 %v279_v0, %v1884_v14  ;;  %v306_v16 = vsub.f32 %v280_v1, %v1884_v14 }
 0x106   : > { %1594 = vmatprep.mubr.msk.f32.mxu0 %vm288_vm0, %v305_v15  ;;  %v307_v17 = vmul.f32 %v305_v15, %v305_v15  ;;  %v308_v18 = vmul.f32 %v306_v16, %v306_v16 }
 0x107   : > { %1595 = vmatmul.mubr.msk.f32.vlgmr.msra.gmra.mxu0 %vm288_vm0, %v306_v16 }
 0x108   : > { %1597 = vmatprep.mubr.msk.f32.mxu1 %vm288_vm0, %v307_v17  ;;  %1623 = vmatprep.mubr.msk.f32.mxu0 %vm1772_vm1, %v1771_v19 }
 0x109   : > { %1598 = vmatmul.mubr.msk.f32.vlgmr.msra.gmra.mxu1 %vm288_vm0, %v308_v18 }
 0x10a   : > { %1604 = vmatprep.mubr.msk.f32.mxu1 %vm1772_vm1, %v1771_v19 }
 0x1c7   : > { %v1596_v39 = vpop.f32.mrf.mxu0 }
 0x1c8   : > { %1601 = vmatpush3.msra.mxu1 %v1596_v39 }
 0x1c9   : > { %v387_v41 = vpop.f32.mrf.mxu0  ;;  %v1599_v42 = vpop.f32.mrf.mxu1  ;;  %1602 = vmatprep.subr.mxu1 %v1771_v19 }
 0x1ca   : > { %1603 = vmatpush3.msra.mxu1 %v387_v41  ;;  %1620 = vmatpush3.msra.mxu0 %v1599_v42 }
 0x1cb   : > { %v397_v43 = vpop.f32.mrf.mxu1  ;;  %1605 = vmatmul.mubr.msk.f32.vlgmr.msra.gmra.mxu1 %vm288_vm0, %v281_v40  ;;  %1621 = vmatprep.subr.mxu0 %v1771_v19 }
 0x1cc   : > { %1622 = vmatpush3.msra.mxu0 %v397_v43  ;;  %1607 = vmatprep.mubr.msk.f32.mxu1 %vm1772_vm1, %v1771_v19  ;;  %v2177_v43 = vpop.permute.xlu0 %766 }
 0x1cd   : > { %1624 = vmatmul.mubr.msk.f32.vlgmr.msra.gmra.mxu0 %vm288_vm0, %v281_v40  ;;  %v2162_v40 = vpop.permute.xlu1 %764 }
 0x1ce   : > { %1626 = vmatprep.mubr.msk.f32.mxu0 %vm1772_vm1, %v1771_v19 }
 0x1cf   : > { %1608 = vmatmul.mubr.msk.f32.gmra.mxu1 %vm288_vm0, %v282_v44 }
 0x1d0   : > { %1610 = vmatprep.mubr.msk.f32.mxu1 %vm1772_vm1, %v1771_v19 }
 0x1d1   : > { %1627 = vmatmul.mubr.msk.f32.gmra.mxu0 %vm288_vm0, %v282_v44  ;;  %v2181_v44 = vpop.permute.xlu1 %925 }
 0x1d2   : > { %1629 = vmatprep.mubr.msk.f32.mxu0 %vm1772_vm1, %v1771_v19 }
 0x1d3   : > { %1611 = vmatmul.mubr.msk.f32.gmra.mxu1 %vm288_vm0, %v283_v45 }
 0x1d4   : > { %1613 = vmatprep.mubr.msk.f32.mxu1 %vm1772_vm1, %v1771_v19 }
 0x1d5   : > { %1630 = vmatmul.mubr.msk.f32.gmra.mxu0 %vm288_vm0, %v283_v45  ;;  %v1555_v45 = vld [vmem:[%s2839_s5 + $0x48] sm:$0xff] }
 0x1d6   : > { %1632 = vmatprep.mubr.msk.f32.mxu0 %vm1772_vm1, %v1771_v19 }
 0x1d7   : > { %1614 = vmatmul.mubr.msk.f32.gmra.mxu1 %vm288_vm0, %v284_v46 }
 0x1d8   : > { %1616 = vmatprep.mubr.msk.f32.mxu1 %vm1772_vm1, %v1771_v19 }
 0x1d9   : > { %1633 = vmatmul.mubr.msk.f32.gmra.mxu0 %vm288_vm0, %v284_v46 }
 0x1da   : > { %1635 = vmatprep.mubr.msk.f32.mxu0 %vm1772_vm1, %v1771_v19 }
 0x1db   : > { %1617 = vmatmul.mubr.msk.f32.gmra.mxu1 %vm288_vm0, %v285_v47 }
 0x1dd   : > { %1636 = vmatmul.mubr.msk.f32.gmra.mxu0 %vm288_vm0, %v285_v47  ;;  %v2194_v47 = vpop.permute.xlu0 %927 }
 0x28b   : > { %v1974_v48 = vpop.f32.mrf.mxu1 }
 0x28c   : > { %2868 = vst [vmem:[#allocation8_spill] sm:$0xff] %v1974_v48  ;;  %738 = vrot.lane.b32.xlu0 %v1974_v48, %s1778_s10 }
 0x28d   : > { %v1978_v49 = vpop.f32.mrf.mxu0  ;;  %v1606_v50 = vpop.f32.mrf.mxu1 }
 0x28e   : > { %954 = vrot.lane.b32.xlu1 %v1978_v49, %s1779_s11  ;;  %v1228_v50 = vrot.slane %v1555_v45, 6 }
 0x28f   : > { %v1625_v51 = vpop.f32.mrf.mxu0  ;;  %v1982_v52 = vpop.f32.mrf.mxu1 }
 0x290   : > { %901 = vrot.lane.b32.xlu0 %v1974_v48, %s1779_s11  ;;  %v2041_v13 = vrot.slane %v1982_v52, 5  ;;  %v2046_v15 = vrot.slane %v1982_v52, 7  ;;  %v607_v19 = vrot.slane %v1982_v52, 3  ;;  %v2198_v51 = vpop.permute.xlu1 %929 }
 0x291   : > { %v1609_v53 = vpop.f32.mrf.mxu1  ;;  %v1986_v54 = vpop.f32.mrf.mxu0  ;;  %2875 = vst [vmem:[#allocation15_spill] sm:$0xff] %v2198_v51 }
 0x292   : > { %1257 = vrot.lane.b32.xlu1 %v1978_v49, %s1780_s12  ;;  %v2065_v16 = vrot.slane %v1986_v54, 5  ;;  %v2072_v17 = vrot.slane %v1986_v54, 7  ;;  %v645_v27 = vrot.slane %v1986_v54, 3 }
 0x293   : > { %v1990_v55 = vpop.f32.mrf.mxu1  ;;  %v1628_v56 = vpop.f32.mrf.mxu0 }
 0x294   : > { %1057 = vrot.lane.b32.xlu0 %v1974_v48, %s1781_s13  ;;  %v2083_v18 = vrot.slane %v1990_v55, 7  ;;  %v608_v20 = vrot.slane %v1990_v55, 3  ;;  %v721_v22 = vrot.slane %v1990_v55, 5 }
 0x295   : > { %v1994_v57 = vpop.f32.mrf.mxu0  ;;  %v1612_v58 = vpop.f32.mrf.mxu1 }
 0x296   : > { %2869 = vst [vmem:[#allocation9_spill] sm:$0xff] %v1994_v57  ;;  %620 = vrot.lane.b32.xlu1 %v1982_v52, %s1782_s14  ;;  %v2094_v21 = vsel %vm606_vm6, %v607_v19, %v608_v20  ;;  %v2104_v23 = vsel %vm883_vm5, %v2046_v15, %v2083_v18  ;;  %v2110_v24 = vsel %vm719_vm7, %v2041_v13, %v721_v22  ;;  %v775_v25 = vrot.slane %v1994_v57, 5 }
 0x297   : > { %v1998_v59 = vpop.f32.mrf.mxu1  ;;  %v1631_v60 = vpop.f32.mrf.mxu0  ;;  %v2118_v26 = vrot.slane %v1994_v57, 7  ;;  %v646_v28 = vrot.slane %v1994_v57, 3  ;;  %v1229_v58 = vsel %vm1226_vm8, %v1227_v38, %v1228_v50 }
 0x298   : > { %1207 = vrot.lane.b32.xlu0 %v1974_v48, %s1780_s12  ;;  %v887_v1 = vrot.slane %v1998_v59, 7  ;;  %v2128_v30 = vsel %vm719_vm7, %v2065_v16, %v775_v25  ;;  %v2147_v34 = vrot.slane %v1998_v59, 3  ;;  %v723_v35 = vrot.slane %v1998_v59, 5  ;;  %v2213_v59 = vpop.permute.xlu0 %1079  ;;  %v2216_v60 = vpop.permute.xlu1 %1081 }
 0x299   : > { %v2002_v61 = vpop.f32.mrf.mxu0  ;;  %v1615_v62 = vpop.f32.mrf.mxu1  ;;  %v2133_v31 = vsel %vm606_vm6, %v645_v27, %v646_v28  ;;  %v2140_v32 = vsel %vm883_vm5, %v2072_v17, %v2118_v26  ;;  %2877 = vst [vmem:[#allocation17_spill] sm:$0xff] %v2216_v60 }
 0x29a   : > { %740 = vrot.lane.b32.xlu1 %v1982_v52, %s1778_s10  ;;  %v2013_v3 = vrot.slane %v2002_v61, 3  ;;  %v940_v6 = vrot.slane %v2002_v61, 7  ;;  %v2158_v39 = vsel %vm606_vm6, %v608_v20, %v2147_v34  ;;  %v2165_v41 = vsel %vm719_vm7, %v721_v22, %v723_v35 }
 0x29b   : > { %v2006_v63 = vpop.f32.mrf.mxu1  ;;  %v1634_v0 = vpop.f32.mrf.mxu0  ;;  %v2173_v42 = vsel %vm883_vm5, %v2083_v18, %v887_v1  ;;  %v777_v56 = vrot.slane %v2002_v61, 5 }
 0x29c   : > { %792 = vrot.lane.b32.xlu0 %v1978_v49, %s1778_s10  ;;  %v1193_v2 = vrot.slane %v2006_v63, 7  ;;  %2870 = vst [vmem:[#allocation10_spill] sm:$0xff] %v2013_v3  ;;  %v2190_v46 = vsel %vm606_vm6, %v646_v28, %v2013_v3  ;;  %v2204_v53 = vsel %vm883_vm5, %v2118_v26, %v940_v6  ;;  %v2224_v37 = vpop.permute.xlu0 %1083  ;;  %v2228_v38 = vpop.permute.xlu1 %1230 }
 0x29d   : > { %v597_v4 = vpop.f32.mrf.mxu0  ;;  %v1618_v5 = vpop.f32.mrf.mxu1  ;;  %2874 = vst [vmem:[#allocation14_spill] sm:$0xff] %v2190_v46  ;;  %2876 = vst [vmem:[#allocation16_spill] sm:$0xff] %v2204_v53  ;;  %v2219_v62 = vsel %vm719_vm7, %v775_v25, %v777_v56 }
 0x29e   : > { %903 = vrot.lane.b32.xlu1 %v1982_v52, %s1779_s11  ;;  %v1243_v7 = vrot.slane %v597_v4, 7  ;;  %v1370_v8 = vrot.slane %v597_v4, 3  ;;  %v2021_v9 = vsel %vm883_vm5, %v887_v1, %v1193_v2  ;;  %2878 = vst [vmem:[#allocation18_spill] sm:$0xff] %v2219_v62  ;;  %v1347_v4 = vrot.slane %v2006_v63, 3 }
 0x29f   : > { %2871 = vst [vmem:[#allocation11_spill] sm:$0xff] %v2021_v9  ;;  %v1637_v10 = vpop.f32.mrf.mxu0 }
 0x2a0   : > { %1103 = vrot.lane.b32.xlu0 %v1978_v49, %s1781_s13  ;;  %v2028_v11 = vsel %vm883_vm5, %v940_v6, %v1243_v7  ;;  %v2032_v12 = vsel %vm606_vm6, %v2013_v3, %v1370_v8  ;;  %v2247_v7 = vsel %vm606_vm6, %v2147_v34, %v1347_v4 }
 0x2a1   : > { %2872 = vst [vmem:[#allocation12_spill] sm:$0xff] %v2028_v11  ;;  %2873 = vst [vmem:[#allocation13_spill] sm:$0xff] %v2032_v12 }
 0x2a2   : > { %1059 = vrot.lane.b32.xlu1 %v1982_v52, %s1781_s13  ;;  %2879 = vst [vmem:[#allocation19_spill] sm:$0xff] %v2247_v7 }
 0x2a4   : > { %658 = vrot.lane.b32.xlu0 %v1986_v54, %s1782_s14 }
 0x2a6   : > { %1209 = vrot.lane.b32.xlu1 %v1982_v52, %s1780_s12 }
 0x2a8   : > { %725 = vrot.lane.b32.xlu0 %v2041_v13, %s1778_s10 }
 0x2aa   : > { %889 = vrot.lane.b32.xlu1 %v2046_v15, %s1779_s11 }
 0x2ac   : > { %956 = vrot.lane.b32.xlu0 %v1986_v54, %s1779_s11 }
 0x2ae   : > { %794 = vrot.lane.b32.xlu1 %v1986_v54, %s1778_s10 }
 0x2b0   : > { %1259 = vrot.lane.b32.xlu0 %v1986_v54, %s1780_s12 }
 0x2b2   : > { %1105 = vrot.lane.b32.xlu1 %v1986_v54, %s1781_s13 }
 0x2b4   : > { %742 = vrot.lane.b32.xlu0 %v1990_v55, %s1778_s10 }
 0x2b6   : > { %622 = vrot.lane.b32.xlu1 %v1990_v55, %s1782_s14 }
 0x2b8   : > { %905 = vrot.lane.b32.xlu0 %v1990_v55, %s1779_s11 }
 0x2ba   : > { %779 = vrot.lane.b32.xlu1 %v2065_v16, %s1778_s10 }
 0x2bc   : > { %1061 = vrot.lane.b32.xlu0 %v1990_v55, %s1781_s13 }
 0x2be   : > { %942 = vrot.lane.b32.xlu1 %v2072_v17, %s1779_s11 }
 0x2c0   : > { %1211 = vrot.lane.b32.xlu0 %v1990_v55, %s1780_s12 }
 0x2c2   : > { %660 = vrot.lane.b32.xlu1 %v1994_v57, %s1782_s14 }
 0x2c4   : > { %796 = vrot.lane.b32.xlu0 %v1994_v57, %s1778_s10 }
 0x2c6   : > { %1195 = vrot.lane.b32.xlu1 %v2083_v18, %s1780_s12 }
 0x2c8   : > { %1107 = vrot.lane.b32.xlu0 %v1994_v57, %s1781_s13 }
 0x2ca   : > { %958 = vrot.lane.b32.xlu1 %v1994_v57, %s1779_s11 }
 0x2cc   : > { %612 = vrot.lane.b32.xlu0 %v2094_v21, %s1782_s14 }
 0x2ce   : > { %1261 = vrot.lane.b32.xlu1 %v1994_v57, %s1780_s12 }
 0x2d0   : > { %891 = vrot.lane.b32.xlu0 %v2104_v23, %s1779_s11 }
 0x2d2   : > { %727 = vrot.lane.b32.xlu1 %v2110_v24, %s1778_s10 }
 0x2d4   : > { %1045 = vrot.lane.b32.xlu0 %v2094_v21, %s1781_s13 }
 0x2d6   : > { %1245 = vrot.lane.b32.xlu1 %v2118_v26, %s1780_s12 }
 0x2d8   : > { %781 = vrot.lane.b32.xlu0 %v2128_v30, %s1778_s10 }
 0x2da   : > { %650 = vrot.lane.b32.xlu1 %v2133_v31, %s1782_s14 }
 0x2dc   : > { %944 = vrot.lane.b32.xlu0 %v2140_v32, %s1779_s11 }
 0x2de   : > { %1091 = vrot.lane.b32.xlu1 %v2133_v31, %s1781_s13 }
 0x2e0   : > { %1049 = vrot.lane.b32.xlu0 %v2147_v34, %s1781_s13 }
 0x2e2   : > { %614 = vrot.lane.b32.xlu1 %v2158_v39, %s1782_s14 }
 0x2e4   : > { %729 = vrot.lane.b32.xlu0 %v2165_v41, %s1778_s10 }
 0x2e6   : > { %893 = vrot.lane.b32.xlu1 %v2173_v42, %s1779_s11 }
 0x2e8   : > { %1197 = vrot.lane.b32.xlu0 %v2173_v42, %s1780_s12 }
 0x2ea   : > { %1047 = vrot.lane.b32.xlu1 %v2158_v39, %s1781_s13 }
 0x2ec   : > { %1093 = vrot.lane.b32.xlu0 %v2190_v46, %s1781_s13 }
 0x2ee   : > { %1095 = vrot.lane.b32.xlu1 %v2013_v3, %s1781_s13  ;;  %s2660_s13 = sld [smem:[#allocation4 + $0x5]] }
 0x2f0   : > { %1247 = vrot.lane.b32.xlu0 %v2204_v53, %s1780_s12 }
 0x2f2   : > { %652 = vrot.lane.b32.xlu1 %v2190_v46, %s1782_s14  ;;  %s1787_s14 = smov 124  }
 0x2f4   : > { %1232 = vrot.lane.b32.xlu0 %v1229_v58, %s1777_s23 }
 0x2f6   : > { %783 = vrot.lane.b32.xlu1 %v2219_v62, %s1778_s10  ;;  %s1786_s10 = smov 120  }
 0x2f8   : > { %1349 = vrot.lane.b32.xlu0 %v2158_v39, %s1783_s17 }
 0x2fa   : > { %946 = vrot.lane.b32.xlu1 %v2204_v53, %s1779_s11 }
 0x2fc   : > { %1357 = vrot.lane.b32.xlu0 %v1974_v48, %s1783_s17 }
 0x2fe   : > { %1199 = vrot.lane.b32.xlu1 %v2021_v9, %s1780_s12  ;;  %v739_v61 = vpop.permute.xlu0 %738 }
 0x300   : > { %v955_v0 = vpop.permute.xlu1 %954  ;;  %1372 = vrot.lane.b32.xlu0 %v2190_v46, %s1783_s17 }
 0x302   : > { %1249 = vrot.lane.b32.xlu1 %v2028_v11, %s1780_s12  ;;  %v902_v1 = vpop.permute.xlu0 %901  ;;  %s2653_s12 = sld [smem:[#allocation2 + $0x5]] }
 0x304   : > { %v2236_v2 = vpop.permute.xlu1 %1257  ;;  %1380 = vrot.lane.b32.xlu0 %v1978_v49, %s1783_s17 }
 0x306   : > { %1234 = vrot.lane.b32.xlu1 %v1228_v50, %s1777_s23  ;;  %v2241_v5 = vpop.permute.xlu0 %1057  ;;  %s1536_s23 = sld [smem:[#allocation4 + $0x1]] }
 0x308   : > { %v2243_v6 = vpop.permute.xlu1 %620 }
 0x30a   : > { %1351 = vrot.lane.b32.xlu1 %v2247_v7, %s1783_s17  ;;  %v2250_v8 = vpop.permute.xlu0 %1207 }
 0x30c   : > { %v2252_v10 = vpop.permute.xlu1 %740 }
 0x30e   : > { %1359 = vrot.lane.b32.xlu1 %v1982_v52, %s1783_s17  ;;  %v793_v19 = vpop.permute.xlu0 %792 }
 0x310   : > { %v2255_v63 = vpop.permute.xlu1 %903 }
 0x312   : > { %1374 = vrot.lane.b32.xlu1 %v2032_v12, %s1783_s17  ;;  %v2258_v20 = vpop.permute.xlu0 %1103 }
 0x314   : > { %v2260_v22 = vpop.permute.xlu1 %1059 }
 0x316   : > { %1382 = vrot.lane.b32.xlu1 %v1986_v54, %s1783_s17  ;;  %v2263_v25 = vpop.permute.xlu0 %658  ;;  %s1642_s17 = smul.u32 96, %s2922_s22 }
 0x318   : > { %v2265_v27 = vpop.permute.xlu1 %1209 }
 0x319   : > { %2880 = vst [vmem:[#allocation20_spill] sm:$0xff] %v2265_v27 }
 0x31a   : > { %v726_v28 = vpop.permute.xlu0 %725 }
 0x31b   : > { %v734_v58 = vadd.f32 %v726_v28, %v1974_v48 }
 0x31c   : > { %v890_v35 = vpop.permute.xlu1 %889 }
 0x31d   : > { %v747_v7 = vsub.f32 %v734_v58, %v739_v61  ;;  %v898_v11 = vadd.f32 %v890_v35, %v1974_v48 }
 0x31e   : > { %v2267_v45 = vpop.permute.xlu0 %956 }
 0x31f   : > { %v753_v53 = vsub.f32 %v747_v7, %v2041_v13  ;;  %v910_v46 = vsub.f32 %v898_v11, %v902_v1 }
 0x320   : > { %v2269_v50 = vpop.permute.xlu1 %794 }
 0x321   : > { %v771_v28 = vmul.f32 %v2154_v36, %v753_v53  ;;  %v916_v51 = vsub.f32 %v910_v46, %v2046_v15 }
 0x322   : > { %v2271_v56 = vpop.permute.xlu0 %1259 }
 0x323   : > { %2881 = vst [vmem:[#allocation21_spill] sm:$0xff] %v2271_v56  ;;  %v813_v27 = vmul.f32 %v771_v28, %v771_v28  ;;  %v934_v11 = vmul.f32 %v2181_v44, %v916_v51 }
 0x324   : > { %v2274_v4 = vpop.permute.xlu1 %1105 }
 0x325   : > { %2882 = vst [vmem:[#allocation22_spill] sm:$0xff] %v2274_v4 }
 0x326   : > { %v2276_v12 = vpop.permute.xlu0 %742 }
 0x328   : > { %v2279_v9 = vpop.permute.xlu1 %622 }
 0x32a   : > { %v2281_v62 = vpop.permute.xlu0 %905 }
 0x32c   : > { %v780_v60 = vpop.permute.xlu1 %779 }
 0x32d   : > { %v788_v3 = vadd.f32 %v780_v60, %v1978_v49 }
 0x32e   : > { %v2285_v56 = vpop.permute.xlu0 %1061 }
 0x32f   : > { %v801_v4 = vsub.f32 %v788_v3, %v793_v19  ;;  %v975_v3 = vmul.f32 %v934_v11, %v934_v11 }
 0x330   : > { %v943_v61 = vpop.permute.xlu1 %942 }
 0x331   : > { %v807_v35 = vsub.f32 %v801_v4, %v2065_v16  ;;  %v951_v58 = vadd.f32 %v943_v61, %v1978_v49 }
 0x332   : > { %v2291_v57 = vpop.permute.xlu0 %1211 }
 0x333   : > { %2883 = vst [vmem:[#allocation23_spill] sm:$0xff] %v2291_v57  ;;  %v810_v13 = vmul.f32 %v807_v35, %v2154_v36  ;;  %v963_v60 = vsub.f32 %v951_v58, %v955_v0 }
 0x334   : > { %v2295_v1 = vpop.permute.xlu1 %660 }
 0x335   : > { %2884 = vst [vmem:[#allocation24_spill] sm:$0xff] %v2295_v1  ;;  %v816_v7 = vsub.f32 %v810_v13, %v813_v27  ;;  %v969_v53 = vsub.f32 %v963_v60, %v2072_v17 }
 0x336   : > { %v2298_v15 = vpop.permute.xlu0 %796 }
 0x337   : > { %2885 = vst [vmem:[#allocation25_spill] sm:$0xff] %v2298_v15  ;;  %v2300_v46 = vmax.f32 %v816_v7, 1e-06  ;;  %v972_v16 = vmul.f32 %v969_v53, %v2181_v44  ;;  %v843_v7 = vadd.f32 %v771_v28, %v1884_v14  ;;  %v2335_v28 = vstv %s1556_s20 }
 0x338   : > { %v1196_v19 = vpop.permute.xlu1 %1195 }
 0x339   : > { %1691 = vrsqrt.f32 %v2300_v46  ;;  %v978_v4 = vsub.f32 %v972_v16, %v975_v3  ;;  %v1204_v17 = vadd.f32 %v1196_v19, %v1974_v48  ;;  %v2321_v3 = vstv %s1535_s18  ;;  %s2791_s18 = scalar_lea.vmem %s2840_s6, %s1642_s17 }
 0x33a   : > { %v2304_v51 = vpop.permute.xlu0 %1107  ;;  %2889 = vst [vmem:[#allocation29_spill] sm:$0xff] %v2321_v3  ;;  %v2324_v16 = vadd.f32 %v934_v11, %v1884_v14  ;;  %vm824_vm9 = vcmp.eq.f32.partialorder %v2300_v46, inf  ;;  %vm826_vm10 = vcmp.eq.f32.partialorder %v2300_v46, 0.0  ;;  %v827_v15 = vand.u32 2147483648, %v2300_v46 }
 0x33b   : > { %2886 = vst [vmem:[#allocation26_spill] sm:$0xff] %v2304_v51  ;;  %v2306_v36 = vmax.f32 %v978_v4, 1e-06  ;;  %v1216_v35 = vsub.f32 %v1204_v17, %v2250_v8  ;;  %v2329_v17 = vstv %s1542_s19 }
 0x33c   : > { %v2308_v0 = vpop.permute.xlu1 %958  ;;  %2890 = vst [vmem:[#allocation30_spill] sm:$0xff] %v2329_v17 }
 0x33d   : > { %2887 = vst [vmem:[#allocation27_spill] sm:$0xff] %v2308_v0  ;;  %1693 = vrsqrt.f32 %v2306_v36  ;;  %v1221_v19 = vsub.f32 %v1216_v35, %v2083_v18  ;;  %v849_v35 = vmul.f32 %v2321_v3, %v843_v7  ;;  %v2347_v0 = vmul.f32 %v2329_v17, %v2324_v16 }
 0x33e   : > { %v613_v44 = vpop.permute.xlu0 %612  ;;  %vm986_vm11 = vcmp.eq.f32.partialorder %v2306_v36, inf  ;;  %vm988_vm12 = vcmp.eq.f32.partialorder %v2306_v36, 0.0 }
 0x33f   : > { %v618_v27 = vadd.f32 %v613_v44, %v1982_v52 }
 0x340   : > { %v2315_v61 = vpop.permute.xlu1 %1261 }
 0x341   : > { %2888 = vst [vmem:[#allocation28_spill] sm:$0xff] %v2315_v61  ;;  %v626_v58 = vsub.f32 %v618_v27, %v2243_v6  ;;  %v2331_v27 = vstv %s1536_s23  ;;  %v2350_v61 = vmul.f32 %v2228_v38, %v1221_v19 }
 0x342   : > { %v892_v13 = vpop.permute.xlu0 %891 }
 0x343   : > { %v899_v60 = vadd.f32 %v892_v13, %v1982_v52  ;;  %v630_v4 = vsub.f32 %v626_v58, %v2094_v21  ;;  %v2333_v13 = vstv %s1543_s25 }
 0x344   : > { %v728_v53 = vpop.permute.xlu1 %727 }
 0x345   : > { %v735_v8 = vadd.f32 %v728_v53, %v1982_v52  ;;  %v911_v11 = vsub.f32 %v899_v60, %v2255_v63 }
 0x346   : > { %v1692_v6 = vpop.eup %1691  ;;  %v1046_v44 = vpop.permute.xlu0 %1045 }
 0x347   : > { %v748_v57 = vsub.f32 %v735_v8, %v2252_v10  ;;  %v1054_v18 = vadd.f32 %v1046_v44, %v1974_v48  ;;  %v823_v53 = vmul.f32 %v1692_v6, %v2300_v46  ;;  %v2353_v10 = vmul.f32 %v2124_v29, %v630_v4 }
 0x348   : > { %v1246_v58 = vpop.permute.xlu1 %1245  ;;  %v917_v19 = vsub.f32 %v911_v11, %v2104_v23  ;;  %v1277_v23 = vmul.f32 %v2350_v61, %v2350_v61 }
 0x349   : > { %v754_v63 = vsub.f32 %v748_v57, %v2110_v24  ;;  %v1254_v60 = vadd.f32 %v1246_v58, %v1978_v49  ;;  %v1066_v6 = vsub.f32 %v1054_v18, %v2241_v5  ;;  %v825_v48 = vsel %vm824_vm9, %v2300_v46, %v823_v53 }
 0x34a   : > { %v1694_v8 = vpop.eup %1693  ;;  %v782_v44 = vpop.permute.xlu0 %781  ;;  %v989_v57 = vand.u32 2147483648, %v2306_v36  ;;  %v828_v18 = vsel %vm826_vm10, %v827_v15, %v825_v48  ;;  %v935_v15 = vmul.f32 %v2194_v47, %v917_v19 }
 0x34b   : > { %v1266_v1 = vsub.f32 %v1254_v60, %v2236_v2  ;;  %v2366_v24 = vmul.f32 %v2162_v40, %v754_v63  ;;  %v789_v5 = vadd.f32 %v782_v44, %v1986_v54  ;;  %v985_v58 = vmul.f32 %v1694_v8, %v2306_v36 }
 0x34c   : > { %v651_v4 = vpop.permute.xlu1 %650  ;;  %v672_v2 = vmul.f32 %v2353_v10, %v2353_v10  ;;  %v1070_v63 = vsub.f32 %v1066_v6, %v2094_v21  ;;  %v852_v51 = vmul.f32 %v843_v7, %v828_v18 }
 0x34d   : > { %v1271_v11 = vsub.f32 %v1266_v1, %v2118_v26  ;;  %v656_v53 = vadd.f32 %v651_v4, %v1986_v54  ;;  %v802_v60 = vsub.f32 %v789_v5, %v2269_v50  ;;  %v987_v48 = vsel %vm986_vm11, %v2306_v36, %v985_v58 }
 0x34e   : > { %v945_v44 = vpop.permute.xlu0 %944  ;;  %v814_v1 = vmul.f32 %v2366_v24, %v2366_v24  ;;  %v856_v7 = vmul.f32 %v2331_v27, %v852_v51  ;;  %v990_v6 = vsel %vm988_vm12, %v989_v57, %v987_v48  ;;  %v2399_v4 = vmul.f32 %v2213_v59, %v1070_v63 }
 0x34f   : > { %v1274_v46 = vmul.f32 %v1271_v11, %v2228_v38  ;;  %v664_v8 = vsub.f32 %v656_v53, %v2263_v25  ;;  %v952_v26 = vadd.f32 %v945_v44, %v1986_v54  ;;  %v808_v21 = vsub.f32 %v802_v60, %v2128_v30 }
 0x350   : > { %v1092_v50 = vpop.permute.xlu1 %1091  ;;  %v859_v18 = vadd.f32 %v856_v7, %v849_v35  ;;  %v1014_v51 = vmul.f32 %v2324_v16, %v990_v6  ;;  %v976_v11 = vmul.f32 %v935_v15, %v935_v15  ;;  %v2444_v6 = vadd.f32 %v2353_v10, %v1884_v14 }
 0x351   : > { %v1280_v5 = vsub.f32 %v1274_v46, %v1277_v23  ;;  %v668_v19 = vsub.f32 %v664_v8, %v2133_v31  ;;  %v964_v38 = vsub.f32 %v952_v26, %v2267_v45  ;;  %v1100_v25 = vadd.f32 %v1092_v50, %v1978_v49 }
 0x352   : > { %v811_v30 = vmul.f32 %v808_v21, %v2162_v40  ;;  %v1050_v58 = vpop.permute.xlu0 %1049  ;;  %865 = vrot.lane.b32.xlu0 %v859_v18, %s1779_s11  ;;  %v1018_v16 = vmul.f32 %v2333_v13, %v1014_v51  ;;  %v1122_v8 = vmul.f32 %v2399_v4, %v2399_v4 }
 0x353   : > { %v2405_v36 = vmax.f32 %v1280_v5, 1e-06  ;;  %v670_v57 = vmul.f32 %v668_v19, %v2124_v29  ;;  %v970_v45 = vsub.f32 %v964_v38, %v2140_v32  ;;  %v1112_v23 = vsub.f32 %v1100_v25, %v2258_v20 }
 0x354   : > { %v817_v53 = vsub.f32 %v811_v30, %v814_v1  ;;  %v1056_v40 = vadd.f32 %v1050_v58, %v1990_v55  ;;  %v615_v35 = vpop.permute.xlu1 %614  ;;  %v1021_v48 = vadd.f32 %v1018_v16, %v2347_v0  ;;  %v2436_v0 = vadd.f32 %v2350_v61, %v1884_v14 }
 0x355   : > { %1695 = vrsqrt.f32 %v2405_v36  ;;  %v674_v29 = vsub.f32 %v670_v57, %v672_v2  ;;  %v973_v32 = vmul.f32 %v970_v45, %v2194_v47  ;;  %v1116_v20 = vsub.f32 %v1112_v23, %v2133_v31 }
 0x356   : > { %v2420_v63 = vmax.f32 %v817_v53, 1e-06  ;;  %v1068_v60 = vsub.f32 %v1056_v40, %v2285_v56  ;;  %v619_v44 = vadd.f32 %v615_v35, %v1990_v55  ;;  %v730_v46 = vpop.permute.xlu0 %729  ;;  %1027 = vrot.lane.b32.xlu1 %v1021_v48, %s1784_s30  ;;  %v2448_v61 = vadd.f32 %v2366_v24, %v1884_v14 }
 0x357   : > { %v2427_v26 = vmax.f32 %v674_v29, 1e-06  ;;  %v1119_v2 = vmul.f32 %v1116_v20, %v2213_v59  ;;  %v736_v47 = vadd.f32 %v730_v46, %v1990_v55  ;;  %v979_v31 = vsub.f32 %v973_v32, %v976_v11  ;;  %v2892_v20 = vld [vmem:[#allocation20_spill] sm:$0xff] }
 0x358   : > { %1697 = vrsqrt.f32 %v2420_v63  ;;  %v627_v1 = vsub.f32 %v619_v44, %v2279_v9  ;;  %v894_v56 = vpop.permute.xlu1 %893  ;;  %v1072_v21 = vsub.f32 %v1068_v60, %v2147_v34  ;;  %v2451_v5 = vadd.f32 %v935_v15, %v1884_v14 }
 0x359   : > { %1699 = vrsqrt.f32 %v2427_v26  ;;  %v1125_v59 = vsub.f32 %v1119_v2, %v1122_v8  ;;  %v749_v50 = vsub.f32 %v736_v47, %v2276_v12  ;;  %v900_v9 = vadd.f32 %v894_v56, %v1990_v55  ;;  %v2893_v8 = vld [vmem:[#allocation9_spill] sm:$0xff] }
 0x35a   : > { %v1198_v7 = vpop.permute.xlu0 %1197  ;;  %v631_v19 = vsub.f32 %v627_v1, %v2158_v39  ;;  %v2456_v12 = vstv %s2403_s27  ;;  %v2459_v38 = vstv %s2396_s26  ;;  %v2465_v24 = vstv %s2415_s29 }
 0x35b   : > { %v755_v34 = vsub.f32 %v749_v50, %v2165_v41  ;;  %v912_v25 = vsub.f32 %v900_v9, %v2281_v62  ;;  %v1205_v10 = vadd.f32 %v1198_v7, %v1982_v52  ;;  %v2467_v58 = vmax.f32 %v979_v31, 1e-06  ;;  %v2894_v31 = vld [vmem:[#allocation22_spill] sm:$0xff] }
 0x35c   : > { %v1048_v30 = vpop.permute.xlu1 %1047  ;;  %v2470_v15 = vmul.f32 %v2224_v37, %v1072_v21  ;;  %v2475_v41 = vmul.f32 %v2335_v28, %v2436_v0  ;;  %v2477_v57 = vmax.f32 %v1125_v59, 1e-06  ;;  %v2891_v45 = vstv %s2312_s24  ;;  %v2895_v50 = vld [vmem:[#allocation26_spill] sm:$0xff] }
 0x35d   : > { %v1055_v51 = vadd.f32 %v1048_v30, %v1982_v52  ;;  %v2482_v23 = vmul.f32 %v2891_v45, %v2444_v6  ;;  %v2486_v11 = vmul.f32 %v2321_v3, %v2448_v61  ;;  %v2490_v53 = vmul.f32 %v2329_v17, %v2451_v5  ;;  %v2897_v45 = vld [vmem:[#allocation10_spill] sm:$0xff] }
 0x35e   : > { %v1094_v62 = vpop.permute.xlu0 %1093  ;;  %v2493_v40 = vmul.f32 %v2144_v33, %v631_v19  ;;  %v2496_v35 = vmul.f32 %v2177_v43, %v755_v34  ;;  %v918_v32 = vsub.f32 %v912_v25, %v2173_v42  ;;  %v1217_v60 = vsub.f32 %v1205_v10, %v2892_v20  ;;  %v2896_v19 = vld [vmem:[#allocation15_spill] sm:$0xff] }
 0x35f   : > { %v1067_v16 = vsub.f32 %v1055_v51, %v2260_v22  ;;  %v1101_v29 = vadd.f32 %v1094_v62, %v1986_v54  ;;  %vm1288_vm13 = vcmp.eq.f32.partialorder %v2405_v36, inf  ;;  %v2505_v48 = vadd.f32 %v2399_v4, %v1884_v14 }
 0x360   : > { %v1096_v44 = vpop.permute.xlu1 %1095  ;;  %1701 = vrsqrt.f32 %v2467_v58  ;;  %v1124_v46 = vmul.f32 %v2470_v15, %v2470_v15  ;;  %vm1290_vm14 = vcmp.eq.f32.partialorder %v2405_v36, 0.0  ;;  %v1291_v4 = vand.u32 2147483648, %v2405_v36 }
 0x361   : > { %v1102_v22 = vadd.f32 %v1096_v44, %v2893_v8  ;;  %1703 = vrsqrt.f32 %v2477_v57  ;;  %v1071_v47 = vsub.f32 %v1067_v16, %v2158_v39  ;;  %v1113_v1 = vsub.f32 %v1101_v29, %v2894_v31  ;;  %v2898_v29 = vld [vmem:[#allocation21_spill] sm:$0xff] }
 0x362   : > { %v1696_v2 = vpop.eup %1695  ;;  %v1248_v56 = vpop.permute.xlu0 %1247  ;;  %v2518_v59 = vmul.f32 %v2493_v40, %v2493_v40  ;;  %v2522_v21 = vmul.f32 %v2496_v35, %v2496_v35  ;;  %v2527_v34 = vmul.f32 %v2896_v19, %v918_v32  ;;  %v1222_v10 = vsub.f32 %v1217_v60, %v2173_v42  ;;  %v2901_v60 = vld [vmem:[#allocation14_spill] sm:$0xff] }
 0x363   : > { %v1114_v9 = vsub.f32 %v1102_v22, %v2895_v50  ;;  %v1255_v7 = vadd.f32 %v1248_v56, %v1986_v54  ;;  %v1287_v30 = vmul.f32 %v1696_v2, %v2405_v36  ;;  %vm680_vm15 = vcmp.eq.f32.partialorder %v2427_v26, inf  ;;  %v2899_v22 = vld [vmem:[#allocation17_spill] sm:$0xff] }
 0x364   : > { %v653_v25 = vpop.permute.xlu1 %652  ;;  %v683_v51 = vand.u32 2147483648, %v2427_v26  ;;  %vm682_vm1 = vcmp.eq.f32.partialorder %v2427_v26, 0.0  ;;  %vm831_vm2 = vcmp.eq.f32.partialorder %v2420_v63, inf  ;;  %v834_v32 = vand.u32 2147483648, %v2420_v63 }
 0x365   : > { %v1698_v62 = vpop.eup %1697  ;;  %v1118_v16 = vsub.f32 %v1114_v9, %v2897_v45  ;;  %v1267_v20 = vsub.f32 %v1255_v7, %v2898_v29  ;;  %v2539_v42 = vmul.f32 %v2899_v22, %v1071_v47  ;;  %v1117_v2 = vsub.f32 %v1113_v1, %v2901_v60  ;;  %v2902_v7 = vld [vmem:[#allocation16_spill] sm:$0xff] }
 0x366   : > { %v1700_v44 = vpop.eup %1699  ;;  %v657_v31 = vadd.f32 %v653_v25, %v2893_v8  ;;  %v1233_v56 = vpop.permute.xlu0 %1232  ;;  %v1289_v50 = vsel %vm1288_vm13, %v2405_v36, %v1287_v30  ;;  %v830_v18 = vmul.f32 %v1698_v62, %v2420_v63  ;;  %v2553_v47 = vmul.f32 %v2527_v34, %v2527_v34  ;;  %v2903_v1 = vld [vmem:[#allocation24_spill] sm:$0xff] }
 0x367   : > { %2900 = vst [vmem:[#allocation20_spill] sm:$0xff] %v2539_v42  ;;  %v1121_v9 = vmul.f32 %v1118_v16, %v2224_v37  ;;  %v1272_v45 = vsub.f32 %v1267_v20, %v2902_v7  ;;  %v2548_v29 = vmul.f32 %v1233_v56, %v1222_v10  ;;  %v1292_v3 = vsel %vm1290_vm14, %v1291_v4, %v1289_v50 }
 0x368   : > { %v665_v17 = vsub.f32 %v657_v31, %v2903_v1  ;;  %v784_v25 = vpop.permute.xlu1 %783  ;;  %vm833_vm3 = vcmp.eq.f32.partialorder %v2420_v63, 0.0  ;;  %v679_v62 = vmul.f32 %v1700_v44, %v2427_v26  ;;  %v1123_v20 = vmul.f32 %v2539_v42, %v2539_v42 }
 0x369   : > { %v1127_v30 = vsub.f32 %v1121_v9, %v1124_v46  ;;  %v1275_v16 = vmul.f32 %v1272_v45, %v1233_v56  ;;  %v1278_v10 = vmul.f32 %v2548_v29, %v2548_v29  ;;  %v790_v1 = vadd.f32 %v784_v25, %v2893_v8  ;;  %v2904_v9 = vld [vmem:[#allocation25_spill] sm:$0xff]  ;;  %v2905_v45 = vld [vmem:[#allocation8_spill] sm:$0xff] }
 0x36a   : > { %v669_v31 = vsub.f32 %v665_v17, %v2901_v60  ;;  %v1350_v36 = vpop.permute.xlu0 %1349  ;;  %v1316_v4 = vmul.f32 %v2436_v0, %v1292_v3  ;;  %v1120_v50 = vmul.f32 %v1117_v2, %v2899_v22  ;;  %v832_v56 = vsel %vm831_vm2, %v2420_v63, %v830_v18  ;;  %v1561_v63 = vld [vmem:[%s2839_s5 + $0x50] sm:$0xff] }
 0x36b   : > { %v2569_v37 = vmax.f32 %v1127_v30, 1e-06  ;;  %v1281_v46 = vsub.f32 %v1275_v16, %v1278_v10  ;;  %vm993_vm4 = vcmp.eq.f32.partialorder %v2467_v58, inf  ;;  %v803_v17 = vsub.f32 %v790_v1, %v2904_v9  ;;  %v2906_v30 = vld [vmem:[#allocation18_spill] sm:$0xff] }
 0x36c   : > { %v671_v44 = vmul.f32 %v669_v31, %v2144_v33  ;;  %v1355_v25 = vadd.f32 %v1350_v36, %v2905_v45  ;;  %v947_v42 = vpop.permute.xlu1 %946  ;;  %v1320_v3 = vmul.f32 %v2456_v12, %v1316_v4  ;;  %vm995_vm5 = vcmp.eq.f32.partialorder %v2467_v58, 0.0 }
 0x36d   : > { %1705 = vrsqrt.f32 %v2569_v37  ;;  %v2581_v0 = vmax.f32 %v1281_v46, 1e-06  ;;  %v953_v22 = vadd.f32 %v947_v42, %v2893_v8  ;;  %v681_v18 = vsel %vm680_vm15, %v2427_v26, %v679_v62  ;;  %v1702_v33 = vpop.eup %1701 }
 0x36e   : > { %v675_v2 = vsub.f32 %v671_v44, %v2518_v59  ;;  %v809_v16 = vsub.f32 %v803_v17, %v2906_v30  ;;  %v1323_v10 = vadd.f32 %v1320_v3, %v2475_v41  ;;  %v1358_v31 = vpop.permute.xlu0 %1357  ;;  %v684_v1 = vsel %vm682_vm1, %v683_v51, %v681_v18  ;;  %v1704_v36 = vpop.eup %1703  ;;  %v2907_v44 = vld [vmem:[#allocation27_spill] sm:$0xff] }
 0x36f   : > { %v1126_v4 = vsub.f32 %v1120_v50, %v1123_v20  ;;  %1707 = vrsqrt.f32 %v2581_v0  ;;  %v1136_v42 = vand.u32 2147483648, %v2477_v57  ;;  %v2596_v62 = vmul.f32 %v2459_v38, %v2505_v48 }
 0x370   : > { %v2598_v46 = vmax.f32 %v675_v2, 1e-06  ;;  %v812_v59 = vmul.f32 %v809_v16, %v2177_v43  ;;  %v965_v41 = vsub.f32 %v953_v22, %v2907_v44  ;;  %1329 = vrot.lane.b32.xlu1 %v1323_v10, %s1785_s7  ;;  %v1363_v26 = vsub.f32 %v1355_v25, %v1358_v31  ;;  %v1200_v51 = vpop.permute.xlu1 %1199 }
 0x371   : > { %v1206_v20 = vadd.f32 %v1200_v51, %v1990_v55  ;;  %v699_v50 = vmul.f32 %v2444_v6, %v684_v1  ;;  %v835_v9 = vsel %vm833_vm3, %v834_v32, %v832_v56  ;;  %v992_v17 = vmul.f32 %v1702_v33, %v2467_v58  ;;  %v2908_v6 = vld [vmem:[#allocation23_spill] sm:$0xff] }
 0x372   : > { %vm1133_vm6 = vcmp.eq.f32.partialorder %v2477_v57, inf  ;;  %1709 = vrsqrt.f32 %v2598_v46  ;;  %v818_v43 = vsub.f32 %v812_v59, %v2522_v21  ;;  %v971_v45 = vsub.f32 %v965_v41, %v2902_v7  ;;  %v1373_v3 = vpop.permute.xlu0 %1372 }
 0x373   : > { %v1366_v25 = vsub.f32 %v1363_v26, %v2158_v39  ;;  %vm1135_vm7 = vcmp.eq.f32.partialorder %v2477_v57, 0.0  ;;  %v2614_v55 = vmax.f32 %v1126_v4, 1e-06  ;;  %v1218_v32 = vsub.f32 %v1206_v20, %v2908_v6  ;;  %v2912_v26 = vld [vmem:[#allocation11_spill] sm:$0xff]  ;;  %v2913_v20 = vld [vmem:[#allocation12_spill] sm:$0xff] }
 0x374   : > { %v2909_v56 = vstv %s2410_s28  ;;  %v853_v18 = vmul.f32 %v2448_v61, %v835_v9  ;;  %v2623_v21 = vmax.f32 %v818_v43, 1e-06  ;;  %v974_v7 = vmul.f32 %v971_v45, %v2896_v19  ;;  %v1250_v33 = vpop.permute.xlu1 %1249 }
 0x375   : > { %v702_v22 = vmul.f32 %v2909_v56, %v699_v50  ;;  %v1378_v39 = vadd.f32 %v1373_v3, %v1978_v49  ;;  %v994_v2 = vsel %vm993_vm4, %v2467_v58, %v992_v17  ;;  %v1256_v10 = vadd.f32 %v1250_v33, %v2893_v8  ;;  %v2911_v8 = vld [vmem:[#allocation28_spill] sm:$0xff] }
 0x376   : > { %v857_v16 = vmul.f32 %v2331_v27, %v853_v18  ;;  %v2910_v31 = vand.u32 2147483648, %v2467_v58  ;;  %v2639_v19 = vadd.f32 %v2548_v29, %v1884_v14  ;;  %1711 = vrsqrt.f32 %v2623_v21  ;;  %v1381_v4 = vpop.permute.xlu0 %1380 }
 0x377   : > { %v704_v30 = vadd.f32 %v702_v22, %v2482_v23  ;;  %v980_v49 = vsub.f32 %v974_v7, %v2553_v47  ;;  %v1368_v1 = vmul.f32 %v1561_v63, %v1366_v25  ;;  %v1268_v59 = vsub.f32 %v1256_v10, %v2911_v8 }
 0x378   : > { %v997_v61 = vsel %vm995_vm5, %v2910_v31, %v994_v2  ;;  %v860_v23 = vadd.f32 %v857_v16, %v2486_v11  ;;  %v1386_v44 = vsub.f32 %v1378_v39, %v1381_v4  ;;  %1713 = vrsqrt.f32 %v2614_v55  ;;  %v1235_v41 = vpop.permute.xlu1 %1234 }
 0x379   : > { %708 = vrot.lane.b32.xlu0 %v704_v30, %s1786_s10  ;;  %v1015_v58 = vmul.f32 %v2451_v5, %v997_v61  ;;  %v2648_v29 = vmax.f32 %v980_v49, 1e-06  ;;  %v1223_v51 = vsub.f32 %v1218_v32, %v2912_v26  ;;  %v1132_v47 = vmul.f32 %v1704_v36, %v2477_v57  ;;  %v1562_v26 = vld [vmem:[%s2839_s5 + $0x58] sm:$0xff] }
 0x37a   : > { %vm1295_vm8 = vcmp.eq.f32.partialorder %v2581_v0, inf  ;;  %867 = vrot.lane.b32.xlu1 %v860_v23, %s1779_s11  ;;  %v1389_v5 = vsub.f32 %v1386_v44, %v2901_v60  ;;  %v1273_v50 = vsub.f32 %v1268_v59, %v2913_v20  ;;  %v1706_v9 = vpop.eup %1705  ;;  %v1393_v17 = vmul.f32 %v1368_v1, %v1368_v1 }
 0x37b   : > { %v1019_v11 = vmul.f32 %v2333_v13, %v1015_v58  ;;  %1715 = vrsqrt.f32 %v2648_v29  ;;  %v1241_v43 = vmul.f32 %v1235_v41, %v1223_v51  ;;  %v1134_v36 = vsel %vm1133_vm6, %v2477_v57, %v1132_v47 }
 0x37c   : > { %v1391_v25 = vmul.f32 %v1561_v63, %v1389_v5  ;;  %v1276_v3 = vmul.f32 %v1273_v50, %v1235_v41  ;;  %v1137_v60 = vsel %vm1135_vm7, %v1136_v42, %v1134_v36  ;;  %v1708_v6 = vpop.eup %1707  ;;  %v1298_v32 = vand.u32 2147483648, %v2581_v0  ;;  %v1352_v18 = vpop.permute.xlu1 %1351 }
 0x37d   : > { %v1022_v45 = vadd.f32 %v1019_v11, %v2490_v53  ;;  %v1279_v56 = vmul.f32 %v1241_v43, %v1241_v43  ;;  %v1161_v22 = vmul.f32 %v2505_v48, %v1137_v60  ;;  %v1146_v7 = vmul.f32 %v1706_v9, %v2569_v37 }
 0x37e   : > { %v1294_v39 = vmul.f32 %v1708_v6, %v2581_v0  ;;  %v1395_v53 = vsub.f32 %v1391_v25, %v1393_v17  ;;  %vm1147_vm9 = vcmp.eq.f32.partialorder %v2569_v37, inf  ;;  %v1150_v57 = vand.u32 2147483648, %v2569_v37 }
 0x37f   : > { %1029 = vrot.lane.b32.xlu0 %v1022_v45, %s1784_s30  ;;  %v1282_v42 = vsub.f32 %v1276_v3, %v1279_v56  ;;  %v1165_v63 = vmul.f32 %v2465_v24, %v1161_v22  ;;  %v1148_v33 = vsel %vm1147_vm9, %v2569_v37, %v1146_v7  ;;  %vm1149_vm10 = vcmp.eq.f32.partialorder %v2569_v37, 0.0  ;;  %v1710_v48 = vpop.eup %1709 }
 0x380   : > { %v1296_v2 = vsel %vm1295_vm8, %v2581_v0, %v1294_v39  ;;  %vm1297_vm11 = vcmp.eq.f32.partialorder %v2581_v0, 0.0  ;;  %v2684_v30 = vmax.f32 %v1395_v53, 1e-06  ;;  %v1151_v16 = vsel %vm1149_vm10, %v1150_v57, %v1148_v33  ;;  %v1360_v49 = vpop.permute.xlu1 %1359 }
 0x381   : > { %v1299_v10 = vsel %vm1297_vm11, %v1298_v32, %v1296_v2  ;;  %v2686_v31 = vmax.f32 %v1282_v42, 1e-06  ;;  %v1168_v61 = vadd.f32 %v1165_v63, %v2596_v62  ;;  %v1154_v37 = vadd.f32 %v2470_v15, %v1884_v14  ;;  %v2917_v42 = vld [vmem:[#allocation13_spill] sm:$0xff] }
 0x382   : > { %v1417_v4 = vstv %s2653_s12  ;;  %1717 = vrsqrt.f32 %v2684_v30  ;;  %v1356_v23 = vadd.f32 %v1352_v18, %v1982_v52  ;;  %v686_v8 = vmul.f32 %v1710_v48, %v2598_v46  ;;  %v2918_v2 = vld [vmem:[#allocation29_spill] sm:$0xff] }
 0x383   : > { %v2697_v0 = vmul.f32 %v2335_v28, %v2639_v19  ;;  %v2700_v59 = vadd.f32 %v1368_v1, %v1884_v14  ;;  %v1422_v58 = vstv %s2660_s13  ;;  %1719 = vrsqrt.f32 %v2686_v31  ;;  %1174 = vrot.lane.b32.xlu0 %v1168_v61, %s1787_s14  ;;  %v1712_v15 = vpop.eup %1711 }
 0x384   : > { %v1317_v62 = vmul.f32 %v2639_v19, %v1299_v10  ;;  %v2707_v52 = vadd.f32 %v1241_v43, %v1884_v14  ;;  %v1364_v44 = vsub.f32 %v1356_v23, %v1360_v49  ;;  %v1163_v41 = vmul.f32 %v1154_v37, %v1151_v16  ;;  %v1375_v1 = vpop.permute.xlu1 %1374  ;;  %v2914_v19 = vld [vmem:[#allocation19_spill] sm:$0xff] }
 0x385   : > { %v1160_v51 = vmul.f32 %v2459_v38, %v1154_v37  ;;  %vm687_vm12 = vcmp.eq.f32.partialorder %v2598_v46, inf  ;;  %vm689_vm13 = vcmp.eq.f32.partialorder %v2598_v46, 0.0  ;;  %v690_v47 = vand.u32 2147483648, %v2598_v46  ;;  %v1714_v11 = vpop.eup %1713 }
 0x386   : > { %v1367_v5 = vsub.f32 %v1364_v44, %v2914_v19  ;;  %v1167_v20 = vmul.f32 %v2465_v24, %v1163_v41  ;;  %v688_v50 = vsel %vm687_vm12, %v2598_v46, %v686_v8  ;;  %v693_v9 = vadd.f32 %v2493_v40, %v1884_v14 }
 0x387   : > { %v1404_v17 = vand.u32 2147483648, %v2684_v30  ;;  %v1379_v43 = vadd.f32 %v1375_v1, %v1986_v54  ;;  %v691_v36 = vsel %vm689_vm13, %v690_v47, %v688_v50  ;;  %v837_v45 = vmul.f32 %v1712_v15, %v2623_v21 }
 0x388   : > { %v1716_v25 = vpop.eup %1715  ;;  %v2724_v3 = vmul.f32 %v1562_v26, %v1367_v5  ;;  %v1170_v60 = vadd.f32 %v1167_v20, %v1160_v51  ;;  %v700_v6 = vmul.f32 %v693_v9, %v691_v36  ;;  %vm838_vm14 = vcmp.eq.f32.partialorder %v2623_v21, inf  ;;  %v1383_v46 = vpop.permute.xlu1 %1382 }
 0x389   : > { %vm1401_vm15 = vcmp.eq.f32.partialorder %v2684_v30, inf  ;;  %v839_v40 = vsel %vm838_vm14, %v2623_v21, %v837_v45  ;;  %v841_v32 = vand.u32 2147483648, %v2623_v21  ;;  %v845_v54 = vadd.f32 %v2496_v35, %v1884_v14 }
 0x38a   : > { %v999_v56 = vmul.f32 %v1716_v25, %v2648_v29  ;;  %vm1403_vm1 = vcmp.eq.f32.partialorder %v2684_v30, 0.0  ;;  %1178 = vrot.lane.b32.xlu0 %v1170_v60, %s1787_s14  ;;  %v1387_v22 = vsub.f32 %v1379_v43, %v1383_v46  ;;  %v2915_v18 = vstv %s2312_s24 }
 0x38b   : > { %v698_v7 = vmul.f32 %v2915_v18, %v693_v9  ;;  %v2916_v39 = vstv %s2410_s28  ;;  %vm840_vm2 = vcmp.eq.f32.partialorder %v2623_v21, 0.0  ;;  %vm1302_vm3 = vcmp.eq.f32.partialorder %v2686_v31, inf }
 0x38c   : > { %v703_v53 = vmul.f32 %v2916_v39, %v700_v6  ;;  %vm1304_vm4 = vcmp.eq.f32.partialorder %v2686_v31, 0.0  ;;  %v1394_v35 = vmul.f32 %v2724_v3, %v2724_v3  ;;  %v842_v57 = vsel %vm840_vm2, %v841_v32, %v839_v40 }
 0x38d   : > { %v1390_v63 = vsub.f32 %v1387_v22, %v2917_v42  ;;  %v854_v48 = vmul.f32 %v845_v54, %v842_v57  ;;  %vm1000_vm5 = vcmp.eq.f32.partialorder %v2648_v29, inf  ;;  %v851_v16 = vmul.f32 %v2918_v2, %v845_v54 }
 0x38e   : > { %v705_v33 = vadd.f32 %v703_v53, %v698_v7  ;;  %v1001_v10 = vsel %vm1000_vm5, %v2648_v29, %v999_v56  ;;  %v1003_v21 = vand.u32 2147483648, %v2648_v29  ;;  %v1007_v61 = vadd.f32 %v2527_v34, %v1884_v14 }
 0x38f   : > { %v1392_v49 = vmul.f32 %v1562_v26, %v1390_v63  ;;  %v858_v37 = vmul.f32 %v2331_v27, %v854_v48  ;;  %vm1002_vm6 = vcmp.eq.f32.partialorder %v2648_v29, 0.0  ;;  %v1139_v23 = vmul.f32 %v1714_v11, %v2614_v55  ;;  %v1718_v8 = vpop.eup %1717  ;;  %v2919_v29 = vld [vmem:[#allocation30_spill] sm:$0xff] }
 0x390   : > { %710 = vrot.lane.b32.xlu1 %v705_v33, %s1786_s10  ;;  %v1305_v15 = vand.u32 2147483648, %v2686_v31  ;;  %v1004_v44 = vsel %vm1002_vm6, %v1003_v21, %v1001_v10  ;;  %v1321_v41 = vmul.f32 %v2456_v12, %v1317_v62  ;;  %vm1140_vm7 = vcmp.eq.f32.partialorder %v2614_v55, inf  ;;  %v1720_v1 = vpop.eup %1719 }
 0x391   : > { %v1400_v34 = vmul.f32 %v1718_v8, %v2684_v30  ;;  %v1396_v26 = vsub.f32 %v1392_v49, %v1394_v35  ;;  %v861_v51 = vadd.f32 %v858_v37, %v851_v16  ;;  %v1016_v47 = vmul.f32 %v1007_v61, %v1004_v44 }
 0x392   : > { %v1301_v27 = vmul.f32 %v1720_v1, %v2686_v31  ;;  %v1013_v19 = vmul.f32 %v2919_v29, %v1007_v61  ;;  %v1141_v11 = vsel %vm1140_vm7, %v2614_v55, %v1139_v23  ;;  %v1143_v5 = vand.u32 2147483648, %v2614_v55 }
 0x393   : > { %v1402_v62 = vsel %vm1401_vm15, %v2684_v30, %v1400_v34  ;;  %v1398_v20 = vmax.f32 %v1396_v26, 1e-06  ;;  %869 = vrot.lane.b32.xlu0 %v861_v51, %s1779_s11  ;;  %v1020_v50 = vmul.f32 %v2333_v13, %v1016_v47  ;;  %vm1142_vm8 = vcmp.eq.f32.partialorder %v2614_v55, 0.0  ;;  %v2920_v13 = vld [vmem:[#allocation20_spill] sm:$0xff] }
 0x394   : > { %v1405_v9 = vsel %vm1403_vm1, %v1404_v17, %v1402_v62  ;;  %v1303_v43 = vsel %vm1302_vm3, %v2686_v31, %v1301_v27  ;;  %v1324_v36 = vadd.f32 %v1321_v41, %v2697_v0  ;;  %v1144_v45 = vsel %vm1142_vm8, %v1143_v5, %v1141_v11 }
 0x395   : > { %v1420_v25 = vmul.f32 %v2700_v59, %v1405_v9  ;;  %v1306_v60 = vsel %vm1304_vm4, %v1305_v15, %v1303_v43  ;;  %1721 = vrsqrt.f32 %v1398_v20  ;;  %v1153_v55 = vadd.f32 %v2920_v13, %v1884_v14 }
 0x396   : > { %v1318_v6 = vmul.f32 %v2707_v52, %v1306_v60  ;;  %v1023_v30 = vadd.f32 %v1020_v50, %v1013_v19  ;;  %v1418_v17 = vmul.f32 %v1417_v4, %v2700_v59  ;;  %v1315_v54 = vmul.f32 %v2335_v28, %v2707_v52 }
 0x397   : > { %v1423_v46 = vmul.f32 %v1422_v58, %v1420_v25  ;;  %1331 = vrot.lane.b32.xlu0 %v1324_v36, %s1785_s7  ;;  %v1162_v0 = vmul.f32 %v1153_v55, %v1144_v45  ;;  %v1159_v40 = vmul.f32 %v2459_v38, %v1153_v55  ;;  %vm1408_vm9 = vcmp.eq.f32.partialorder %v1398_v20, inf }
 0x398   : > { %1031 = vrot.lane.b32.xlu1 %v1023_v30, %s1784_s30  ;;  %v1322_v59 = vmul.f32 %v2456_v12, %v1318_v6  ;;  %v1411_v12 = vand.u32 2147483648, %v1398_v20  ;;  %vm1410_vm10 = vcmp.eq.f32.partialorder %v1398_v20, 0.0  ;;  %vm875_vm11 = vcmask 130055  }
 0x399   : > { %v1425_v31 = vadd.f32 %v1423_v46, %v1418_v17  ;;  %v1166_v32 = vmul.f32 %v2465_v24, %v1162_v0  ;;  %v1414_v24 = vadd.f32 %v2724_v3, %v1884_v14  ;;  %vm1037_vm12 = vcmask 130054  }
 0x39a   : > { %v1325_v22 = vadd.f32 %v1322_v59, %v1315_v54  ;;  %vm1339_vm13 = vcmask 130050   ;;  %vm1184_vm14 = vcmask 130052   ;;  %vm1187_vm15 = vcmask 125952  }
 0x39b   : > { %1565 = vst.msk [vmem:[%s2791_s18 + $0x50] sm:$0xff] %vm288_vm0, %v1425_v31  ;;  %v1169_v56 = vadd.f32 %v1166_v32, %v1159_v40  ;;  %v1419_v39 = vmul.f32 %v1417_v4, %v1414_v24  ;;  %vm878_vm1 = vcmask 129024   ;;  %vm1040_vm2 = vcmask 128000  }
 0x39c   : > { %vm1342_vm3 = vcmask 123904  }
 0x39d   : > { %1176 = vrot.lane.b32.xlu1 %v1169_v56, %s1787_s14 }
 0x3a1   : > { %1333 = vrot.lane.b32.xlu1 %v1325_v22, %s1785_s7 }
 0x3a2   : > { %v1722_v38 = vpop.eup %1721 }
 0x3a3   : > { %v1407_v18 = vmul.f32 %v1722_v38, %v1398_v20 }
 0x3a5   : > { %v1409_v7 = vsel %vm1408_vm9, %v1398_v20, %v1407_v18 }
 0x3a6   : > { %v1412_v28 = vsel %vm1410_vm10, %v1411_v12, %v1409_v7 }
 0x3a7   : > { %v1421_v52 = vmul.f32 %v1414_v24, %v1412_v28 }
 0x3a9   : > { %v1424_v53 = vmul.f32 %v1422_v58, %v1421_v52 }
 0x3ab   : > { %v1426_v35 = vadd.f32 %v1424_v53, %v1419_v39 }
 0x3ad   : > { %1566 = vst.msk [vmem:[%s2791_s18 + $0x58] sm:$0xff] %vm288_vm0, %v1426_v35 }
 0x3c4   : > { %v866_v57 = vpop.permute.xlu0 %865 }
 0x3c5   : > { %1537 = vst.msk [vmem:[%s2791_s18 + $0x9] sm:$0x80] %vm875_vm11, %v866_v57 }
 0x3c8   : > { %v1028_v14 = vpop.permute.xlu1 %1027 }
 0x3c9   : > { %1544 = vst.msk [vmem:[%s2791_s18 + $0x1a] sm:$0xc0] %vm1037_vm12, %v1028_v14 }
 0x3e2   : > { %v1330_v3 = vpop.permute.xlu1 %1329 }
 0x3e3   : > { %1558 = vst.msk [vmem:[%s2791_s18 + $0x3e] sm:$0xfc] %vm1339_vm13, %v1330_v3 }
 0x3eb   : > { %v709_v4 = vpop.permute.xlu0 %708 }
 0x3ec   : > { %714 = vst.msk [vmem:[%s2791_s18] sm:$0xff] %vm288_vm0, %v709_v4  ;;  %v868_v58 = vpop.permute.xlu1 %867 }
 0x3ed   : > { %1538 = vst.msk [vmem:[%s2791_s18 + $0x11] sm:$0xff] %vm288_vm0, %v868_v58 }
 0x3f1   : > { %v1030_v42 = vpop.permute.xlu0 %1029 }
 0x3f2   : > { %1545 = vst.msk [vmem:[%s2791_s18 + $0x22] sm:$0xff] %vm288_vm0, %v1030_v42 }
 0x3f5   : > { %v1175_v63 = vpop.permute.xlu0 %1174 }
 0x3f6   : > { %1551 = vst.msk [vmem:[%s2791_s18 + $0x2c] sm:$0xf0] %vm1184_vm14, %v1175_v63 }
 0x3fc   : > { %v1179_v33 = vpop.permute.xlu0 %1178 }
 0x3fd   : > { %1553 = vst.msk [vmem:[%s2791_s18 + $0x3c] sm:$0xf] %vm1187_vm15, %v1179_v33 }
 0x402   : > { %v711_v48 = vpop.permute.xlu1 %710 }
 0x403   : > { %715 = vst.msk [vmem:[%s2791_s18 + $0x8] sm:$0xff] %vm288_vm0, %v711_v48 }
 0x405   : > { %v870_v2 = vpop.permute.xlu0 %869 }
 0x406   : > { %1539 = vst.msk [vmem:[%s2791_s18 + $0x19] sm:$0x7f] %vm878_vm1, %v870_v2 }
 0x409   : > { %v1332_v16 = vpop.permute.xlu0 %1331 }
 0x40a   : > { %v1032_v10 = vpop.permute.xlu1 %1031  ;;  %1559 = vst.msk [vmem:[%s2791_s18 + $0x46] sm:$0xff] %vm288_vm0, %v1332_v16 }
 0x40b   : > { %1546 = vst.msk [vmem:[%s2791_s18 + $0x2a] sm:$0x3f] %vm1040_vm2, %v1032_v10 }
 0x40f   : > { %v1177_v21 = vpop.permute.xlu1 %1176 }
 0x410   : > { %1552 = vst.msk [vmem:[%s2791_s18 + $0x34] sm:$0xff] %vm288_vm0, %v1177_v21 }
 0x413   : > { %v1334_v61 = vpop.permute.xlu1 %1333 }
 0x414   : > { %1560 = vst.msk [vmem:[%s2791_s18 + $0x4e] sm:$0x3] %vm1342_vm3, %v1334_v61 }
 0x415 PF: > { %s18_s21 = sadd.s32 1, %s1767_s21  }
 0x416   : > { %p15_p5 = scmp.ge.s32.totalorder %s18_s21, 10  }
 0x418   :  { %17 = sbr.rel (!%p15_p5) target bundleno = 2 (0x2), region = 93 }
 0x41d   :  { %1451 = vsyncpa [#allocation3], 1 }
 0x41e   :  { %1453 = vsyncpa [#allocation3 + $0x1], 1 }
 0x41f   :  { %1454 = vsyncpa [#allocation5], 1 }

</bundles_post_ra>
